<compile_context>
chip_gen: v6e
topology: v6e:2x2x1
jax: 0.10.0
libtpu: 0.0.40
codegen_flags: <defaults>
</compile_context>

<pallas_src>
import functools
import math

import jax
import jax.numpy as jnp
from jax.experimental import pallas as pl
from jax.experimental.pallas import tpu as pltpu

_VMEM = pl.BlockSpec(memory_space=pltpu.MemorySpace.VMEM)
_SMEM = pl.BlockSpec(memory_space=pltpu.MemorySpace.SMEM)

CFG = dict(vocab=100, max_pos=32, type_vocab=2, hidden=32, layers=2, heads=2,
           inter=64, ent_vec=16, n_entities=20, mlp_hidden=48, n_classes=4)


# --------------------------- fused encoder kernel ----------------------------

def _encoder_kernel(x_ref, mask_ref, emb_g_ref, emb_b_ref,
                    wqkv_ref, bqkv_ref, wo_ref, bo_ref,
                    ln1g_ref, ln1b_ref, wi_ref, bi_ref,
                    wo2_ref, bo2_ref, ln2g_ref, ln2b_ref,
                    poolw_ref, poolb_ref,
                    pooled_ref, *, B, S, H, nH, L, eps, scale):
    """Entire BERT encoder (L layers) + pooler in a single invocation.

    x_ref: [B*S, H] embedding sum (pre-LayerNorm).  All per-layer weights are
    stacked along a leading L axis and sliced with static indices; Q/K/V share
    one [H, 3H] matmul and heads are split with static column slices so no
    [B, nH, S, dh] tensor ever hits HBM.
    """
    dh = H // nH

    def layernorm(h, g, b):
        mu = jnp.mean(h, axis=-1, keepdims=True)
        var = jnp.mean((h - mu) ** 2, axis=-1, keepdims=True)
        return (h - mu) * jax.lax.rsqrt(var + eps) * g + b

    mask = mask_ref[...]                                   # [B, S] additive bias
    xf = layernorm(x_ref[...], emb_g_ref[...], emb_b_ref[...])
    # dropout layers are identity (eval-mode semantics)

    for l in range(L):                                     # static unrolled loop
        # ---- fused QKV projection: one [B*S, H] x [H, 3H] matmul ----
        qkv = jnp.dot(xf, wqkv_ref[l],
                      preferred_element_type=jnp.float32) + bqkv_ref[l]
        q = qkv[:, 0 * H:1 * H]
        k = qkv[:, 1 * H:2 * H]
        v = qkv[:, 2 * H:3 * H]

        # ---- multi-head attention, head split/merge in-kernel ----
        ctx_rows = []
        for b in range(B):
            r0, r1 = b * S, (b + 1) * S
            bias_b = mask[b:b + 1, :]                      # (1, S) broadcast over keys
            head_ctx = []
            for h in range(nH):
                c0, c1 = h * dh, (h + 1) * dh
                qh = q[r0:r1, c0:c1]                       # [S, dh]
                kh = k[r0:r1, c0:c1]
                vh = v[r0:r1, c0:c1]
                s = jax.lax.dot_general(qh, kh, (((1,), (1,)), ((), ())),
                                        preferred_element_type=jnp.float32) * scale
                s = s + bias_b
                m = jnp.max(s, axis=-1, keepdims=True)
                p = jnp.exp(s - m)
                denom = jnp.sum(p, axis=-1, keepdims=True)
                p = p * pl.reciprocal(denom, approx=True)  # EUP-slot reciprocal
                head_ctx.append(jnp.dot(p, vh, preferred_element_type=jnp.float32))
            ctx_rows.append(jnp.concatenate(head_ctx, axis=-1))   # [S, H]
        ctx = jnp.concatenate(ctx_rows, axis=0)                   # [B*S, H]

        attn_out = jnp.dot(ctx, wo_ref[l],
                           preferred_element_type=jnp.float32) + bo_ref[l]
        x1 = layernorm(xf + attn_out, ln1g_ref[l], ln1b_ref[l])

        # ---- FFN ----
        inter = jnp.dot(x1, wi_ref[l],
                        preferred_element_type=jnp.float32) + bi_ref[l]
        # TODO(synk): HF BERT uses exact erf-GELU; tanh approximation used (Mosaic-safe).
        c = math.sqrt(2.0 / math.pi)
        inter = 0.5 * inter * (1.0 + jnp.tanh(c * (inter + 0.044715 * inter * inter * inter)))
        ffn = jnp.dot(inter, wo2_ref[l],
                      preferred_element_type=jnp.float32) + bo2_ref[l]
        xf = layernorm(x1 + ffn, ln2g_ref[l], ln2b_ref[l])

    # ---- pooler: tanh(CLS @ W + b) ----
    cls_rows = jnp.concatenate([xf[b * S:b * S + 1, :] for b in range(B)], axis=0)
    pooled = jnp.tanh(jnp.dot(cls_rows, poolw_ref[...],
                              preferred_element_type=jnp.float32) + poolb_ref[...])
    pooled_ref[...] = pooled


def pallas_encoder(x, mask_bias, p, cfg):
    B, S = mask_bias.shape
    H = cfg["hidden"]
    kern = functools.partial(
        _encoder_kernel, B=B, S=S, H=H, nH=cfg["heads"], L=cfg["layers"],
        eps=1e-12, scale=1.0 / math.sqrt(H // cfg["heads"]))
    return pl.pallas_call(
        kern,
        out_shape=jax.ShapeDtypeStruct((B, H), jnp.float32),
        in_specs=[_VMEM] * 18,
        out_specs=_VMEM,
    )(x, mask_bias,
      p["emb_ln_g"], p["emb_ln_b"],
      p["wqkv"], p["bqkv"], p["wo"], p["bo"],
      p["ln1_g"], p["ln1_b"], p["wi"], p["bi"],
      p["wo2"], p["bo2"], p["ln2_g"], p["ln2_b"],
      p["pool_w"], p["pool_b"])


# --------------------- fused head (+ cross-entropy) kernel -------------------

def _mlp_logits(pooled_ref, ent_ref, w1_ref, b1_ref, w2_ref, b2_ref, w3_ref, b3_ref):
    pooled = pooled_ref[...]                                  # [B, H]
    ent = jnp.sum(ent_ref[...], axis=1)                       # entity_emb.sum(dim=1)
    x = jnp.concatenate([pooled, ent], axis=-1)               # torch.cat(..., dim=1)
    # mlp: Linear -> (Dropout=id) -> ReLU -> Linear -> (Dropout=id) -> ReLU -> Linear
    h = jnp.maximum(jnp.dot(x, w1_ref[...], preferred_element_type=jnp.float32)
                    + b1_ref[...], 0.0)
    h = jnp.maximum(jnp.dot(h, w2_ref[...], preferred_element_type=jnp.float32)
                    + b2_ref[...], 0.0)
    return jnp.dot(h, w3_ref[...], preferred_element_type=jnp.float32) + b3_ref[...]


def _head_kernel(pooled_ref, ent_ref, w1_ref, b1_ref, w2_ref, b2_ref, w3_ref,
                 b3_ref, logits_ref):
    logits_ref[...] = _mlp_logits(pooled_ref, ent_ref, w1_ref, b1_ref,
                                  w2_ref, b2_ref, w3_ref, b3_ref)


def _head_ce_kernel(labels_ref, pooled_ref, ent_ref, w1_ref, b1_ref, w2_ref,
                    b2_ref, w3_ref, b3_ref, logits_ref, loss_ref, *, B, C):
    logits = _mlp_logits(pooled_ref, ent_ref, w1_ref, b1_ref,
                         w2_ref, b2_ref, w3_ref, b3_ref)
    logits_ref[...] = logits
    # one-hot built in-kernel from SMEM labels (no host-side one_hot array)
    iota = jax.lax.broadcasted_iota(jnp.int32, (1, C), 1)
    onehot = jnp.concatenate(
        [(iota == labels_ref[b]).astype(jnp.float32) for b in range(B)], axis=0)
    m = jnp.max(logits, axis=-1, keepdims=True)
    lse = m + jnp.log(jnp.sum(jnp.exp(logits - m), axis=-1, keepdims=True))
    nll = lse - jnp.sum(onehot * logits, axis=-1, keepdims=True)   # (B, 1)
    loss_ref[...] = jnp.mean(nll, axis=0, keepdims=True)           # (1, 1)


def pallas_head(pooled, ent, p, labels=None, n_classes=4):
    B = pooled.shape[0]
    args = (pooled, ent, p["mlp_w1"], p["mlp_b1"], p["mlp_w2"], p["mlp_b2"],
            p["mlp_w3"], p["mlp_b3"])
    if labels is None:
        logits = pl.pallas_call(
            _head_kernel,
            out_shape=jax.ShapeDtypeStruct((B, n_classes), jnp.float32),
            in_specs=[_VMEM] * 8,
            out_specs=_VMEM,
        )(*args)
        return logits, None
    kern = functools.partial(_head_ce_kernel, B=B, C=n_classes)
    logits, loss = pl.pallas_call(
        kern,
        out_shape=(jax.ShapeDtypeStruct((B, n_classes), jnp.float32),
                   jax.ShapeDtypeStruct((1, 1), jnp.float32)),
        in_specs=[_SMEM] + [_VMEM] * 8,
        out_specs=(_VMEM, _VMEM),
    )(labels.astype(jnp.int32), *args)
    return logits, loss


# --------------------------- params (synthetic) -------------------------------

def init_params(key, cfg):
    H, I, L = cfg["hidden"], cfg["inter"], cfg["layers"]
    ks = iter(jax.random.split(key, 64))

    def w(shape, scale=0.02):
        return jax.random.normal(next(ks), shape, jnp.float32) * scale

    p = {}
    p["word_emb"] = w((cfg["vocab"], H))
    p["pos_emb"] = w((cfg["max_pos"], H))
    p["type_emb"] = w((cfg["type_vocab"], H))
    p["emb_ln_g"] = jnp.ones((1, H), jnp.float32)
    p["emb_ln_b"] = jnp.zeros((1, H), jnp.float32)
    # encoder weights stacked along a leading layer axis; Q/K/V fused into [H, 3H]
    p["wqkv"] = w((L, H, 3 * H)); p["bqkv"] = jnp.zeros((L, 1, 3 * H), jnp.float32)
    p["wo"] = w((L, H, H));       p["bo"] = jnp.zeros((L, 1, H), jnp.float32)
    p["ln1_g"] = jnp.ones((L, 1, H), jnp.float32)
    p["ln1_b"] = jnp.zeros((L, 1, H), jnp.float32)
    p["wi"] = w((L, H, I));       p["bi"] = jnp.zeros((L, 1, I), jnp.float32)
    p["wo2"] = w((L, I, H));      p["bo2"] = jnp.zeros((L, 1, H), jnp.float32)
    p["ln2_g"] = jnp.ones((L, 1, H), jnp.float32)
    p["ln2_b"] = jnp.zeros((L, 1, H), jnp.float32)
    p["pool_w"] = w((H, H));      p["pool_b"] = jnp.zeros((1, H), jnp.float32)
    kg = jax.random.normal(next(ks), (cfg["n_entities"], cfg["ent_vec"]), jnp.float32) * 0.1
    p["kg_emb"] = kg.at[0].set(0.0)            # row 0 as padding entity
    HE = H + cfg["ent_vec"]
    p["mlp_w1"] = w((HE, cfg["mlp_hidden"]))
    p["mlp_b1"] = jnp.zeros((1, cfg["mlp_hidden"]), jnp.float32)
    p["mlp_w2"] = w((cfg["mlp_hidden"], HE))
    p["mlp_b2"] = jnp.zeros((1, HE), jnp.float32)
    p["mlp_w3"] = w((HE, cfg["n_classes"]))
    p["mlp_b3"] = jnp.zeros((1, cfg["n_classes"]), jnp.float32)
    return p


# ------------------------------- forward --------------------------------------

def forward(params, input_ids, attention_mask, entity_ids, labels=None, cfg=CFG):
    B, S = input_ids.shape
    H = cfg["hidden"]

    # TODO(synk): embedding-table lookups (word/pos/type, KG) are host-side XLA
    # gathers (glue); token_type_ids default to 0 as in the reference forward.
    x = (params["word_emb"][input_ids]
         + params["pos_emb"][jnp.arange(S)][None, :, :]
         + params["type_emb"][0][None, None, :])
    mask_bias = (1.0 - attention_mask.astype(jnp.float32)) * -10000.0       # [B, S]

    # single fused pallas_call: emb-LN -> L x (QKV/attn/LN/FFN/LN) -> pooler
    pooled = pallas_encoder(x.reshape(B * S, H).astype(jnp.float32),
                            mask_bias, params, cfg)

    ent_gathered = params["kg_emb"][entity_ids]                              # [B, K, E]
    logits, loss = pallas_head(pooled, ent_gathered, params,
                               labels=labels, n_classes=cfg["n_classes"])
    if labels is not None:
        return loss[0, 0], logits
    return (logits,)


if __name__ == "__main__":
    key = jax.random.PRNGKey(0)
    pkey, dkey = jax.random.split(key)
    params = init_params(pkey, CFG)

    B, S, K = 2, 8, 3
    k1, k2, k3 = jax.random.split(dkey, 3)
    input_ids = jax.random.randint(k1, (B, S), 0, CFG["vocab"], dtype=jnp.int32)
    attention_mask = jnp.ones((B, S), jnp.int32).at[1, 6:].set(0)
    entity_ids = jax.random.randint(k2, (B, K), 0, CFG["n_entities"], dtype=jnp.int32)
    labels = jax.random.randint(k3, (B,), 0, CFG["n_classes"], dtype=jnp.int32)

    loss, logits = forward(params, input_ids, attention_mask, entity_ids, labels)
    jax.block_until_ready((loss, logits))
    assert logits.shape == (B, CFG["n_classes"]) and loss.shape == ()

    # labels=None path (logits-only) also exercised once
    (logits_only,) = forward(params, input_ids, attention_mask, entity_ids, None)
    jax.block_until_ready(logits_only)
    assert logits_only.shape == (B, CFG["n_classes"])
    print("KERNEL_OK")
</pallas_src>

<mosaic_0001>
module attributes {stable_mosaic.version = 11 : i64} {
  func.func @_encoder_kernel(%arg0: memref<16x32xf32, #tpu.memory_space<vmem>>, %arg1: memref<2x8xf32, #tpu.memory_space<vmem>>, %arg2: memref<1x32xf32, #tpu.memory_space<vmem>>, %arg3: memref<1x32xf32, #tpu.memory_space<vmem>>, %arg4: memref<2x32x96xf32, #tpu.memory_space<vmem>>, %arg5: memref<2x1x96xf32, #tpu.memory_space<vmem>>, %arg6: memref<2x32x32xf32, #tpu.memory_space<vmem>>, %arg7: memref<2x1x32xf32, #tpu.memory_space<vmem>>, %arg8: memref<2x1x32xf32, #tpu.memory_space<vmem>>, %arg9: memref<2x1x32xf32, #tpu.memory_space<vmem>>, %arg10: memref<2x32x64xf32, #tpu.memory_space<vmem>>, %arg11: memref<2x1x64xf32, #tpu.memory_space<vmem>>, %arg12: memref<2x64x32xf32, #tpu.memory_space<vmem>>, %arg13: memref<2x1x32xf32, #tpu.memory_space<vmem>>, %arg14: memref<2x1x32xf32, #tpu.memory_space<vmem>>, %arg15: memref<2x1x32xf32, #tpu.memory_space<vmem>>, %arg16: memref<32x32xf32, #tpu.memory_space<vmem>>, %arg17: memref<1x32xf32, #tpu.memory_space<vmem>>, %arg18: memref<2x32xf32, #tpu.memory_space<vmem>>) attributes {dimension_semantics = [], scalar_prefetch = 0 : i64, scratch_operands = 0 : i64, tpu.core_type = #tpu.core_type<tc>} {
    %c0 = arith.constant 0 : index
    %c0_0 = arith.constant 0 : index
    %0 = vector.load %arg1[%c0, %c0_0] : memref<2x8xf32, #tpu.memory_space<vmem>>, vector<2x8xf32>
    %c0_1 = arith.constant 0 : index
    %c0_2 = arith.constant 0 : index
    %1 = vector.load %arg0[%c0_1, %c0_2] : memref<16x32xf32, #tpu.memory_space<vmem>>, vector<16x32xf32>
    %c0_3 = arith.constant 0 : index
    %c0_4 = arith.constant 0 : index
    %2 = vector.load %arg2[%c0_3, %c0_4] : memref<1x32xf32, #tpu.memory_space<vmem>>, vector<1x32xf32>
    %c0_5 = arith.constant 0 : index
    %c0_6 = arith.constant 0 : index
    %3 = vector.load %arg3[%c0_5, %c0_6] : memref<1x32xf32, #tpu.memory_space<vmem>>, vector<1x32xf32>
    %cst = arith.constant dense<0.000000e+00> : vector<16xf32>
    %4 = vector.multi_reduction <add>, %1, %cst [1] : vector<16x32xf32> to vector<16xf32>
    %5 = vector.shape_cast %4 : vector<16xf32> to vector<16x1xf32>
    %cst_7 = arith.constant 3.200000e+01 : f32
    %6 = vector.broadcast %cst_7 : f32 to vector<16x1xf32>
    %7 = arith.divf %5, %6 : vector<16x1xf32>
    %8 = vector.broadcast %7 : vector<16x1xf32> to vector<16x32xf32>
    %9 = arith.subf %1, %8 : vector<16x32xf32>
    %10 = arith.mulf %9, %9 : vector<16x32xf32>
    %cst_8 = arith.constant dense<0.000000e+00> : vector<16xf32>
    %11 = vector.multi_reduction <add>, %10, %cst_8 [1] : vector<16x32xf32> to vector<16xf32>
    %12 = vector.shape_cast %11 : vector<16xf32> to vector<16x1xf32>
    %cst_9 = arith.constant 3.200000e+01 : f32
    %13 = vector.broadcast %cst_9 : f32 to vector<16x1xf32>
    %14 = arith.divf %12, %13 : vector<16x1xf32>
    %15 = vector.broadcast %7 : vector<16x1xf32> to vector<16x32xf32>
    %16 = arith.subf %1, %15 : vector<16x32xf32>
    %cst_10 = arith.constant 9.99999996E-13 : f32
    %17 = vector.broadcast %cst_10 : f32 to vector<16x1xf32>
    %18 = arith.addf %14, %17 : vector<16x1xf32>
    %19 = math.rsqrt %18 : vector<16x1xf32>
    %20 = vector.broadcast %19 : vector<16x1xf32> to vector<16x32xf32>
    %21 = arith.mulf %16, %20 : vector<16x32xf32>
    %22 = vector.broadcast %2 : vector<1x32xf32> to vector<16x32xf32>
    %23 = arith.mulf %21, %22 : vector<16x32xf32>
    %24 = vector.broadcast %3 : vector<1x32xf32> to vector<16x32xf32>
    %25 = arith.addf %23, %24 : vector<16x32xf32>
    %c0_11 = arith.constant 0 : index
    %c0_12 = arith.constant 0 : index
    %c0_13 = arith.constant 0 : index
    %26 = vector.load %arg4[%c0_11, %c0_12, %c0_13] : memref<2x32x96xf32, #tpu.memory_space<vmem>>, vector<1x32x96xf32>
    %27 = vector.shape_cast %26 : vector<1x32x96xf32> to vector<32x96xf32>
    %cst_14 = arith.constant dense<0.000000e+00> : vector<16x96xf32>
    %28 = tpu.matmul %25, %27, %cst_14 {dimension_numbers = #tpu.dot_dimension_numbers<[1], [0], [0], [1], [0, 0, 1, 1], [], []>} : vector<16x32xf32>, vector<32x96xf32>, vector<16x96xf32> -> vector<16x96xf32>
    %c0_15 = arith.constant 0 : index
    %c0_16 = arith.constant 0 : index
    %c0_17 = arith.constant 0 : index
    %29 = vector.load %arg5[%c0_15, %c0_16, %c0_17] : memref<2x1x96xf32, #tpu.memory_space<vmem>>, vector<1x1x96xf32>
    %30 = vector.shape_cast %29 : vector<1x1x96xf32> to vector<1x96xf32>
    %31 = vector.broadcast %30 : vector<1x96xf32> to vector<16x96xf32>
    %32 = arith.addf %28, %31 : vector<16x96xf32>
    %33 = vector.extract_strided_slice %32 {offsets = [0, 0], sizes = [16, 32], strides = [1, 1]} : vector<16x96xf32> to vector<16x32xf32>
    %34 = vector.extract_strided_slice %32 {offsets = [0, 32], sizes = [16, 32], strides = [1, 1]} : vector<16x96xf32> to vector<16x32xf32>
    %35 = vector.extract_strided_slice %32 {offsets = [0, 64], sizes = [16, 32], strides = [1, 1]} : vector<16x96xf32> to vector<16x32xf32>
    %36 = vector.extract_strided_slice %0 {offsets = [0, 0], sizes = [1, 8], strides = [1, 1]} : vector<2x8xf32> to vector<1x8xf32>
    %37 = vector.extract_strided_slice %33 {offsets = [0, 0], sizes = [8, 16], strides = [1, 1]} : vector<16x32xf32> to vector<8x16xf32>
    %38 = vector.extract_strided_slice %34 {offsets = [0, 0], sizes = [8, 16], strides = [1, 1]} : vector<16x32xf32> to vector<8x16xf32>
    %39 = vector.extract_strided_slice %35 {offsets = [0, 0], sizes = [8, 16], strides = [1, 1]} : vector<16x32xf32> to vector<8x16xf32>
    %cst_18 = arith.constant dense<0.000000e+00> : vector<8x8xf32>
    %40 = tpu.matmul %37, %38, %cst_18 {dimension_numbers = #tpu.dot_dimension_numbers<[1], [1], [0], [0], [0, 0, 1, 0], [], []>} : vector<8x16xf32>, vector<8x16xf32>, vector<8x8xf32> -> vector<8x8xf32>
    %cst_19 = arith.constant 2.500000e-01 : f32
    %41 = vector.broadcast %cst_19 : f32 to vector<8x8xf32>
    %42 = arith.mulf %40, %41 : vector<8x8xf32>
    %43 = vector.broadcast %36 : vector<1x8xf32> to vector<8x8xf32>
    %44 = arith.addf %42, %43 : vector<8x8xf32>
    %cst_20 = arith.constant dense<0xFF800000> : vector<8xf32>
    %45 = vector.multi_reduction <maximumf>, %44, %cst_20 [1] : vector<8x8xf32> to vector<8xf32>
    %46 = vector.shape_cast %45 : vector<8xf32> to vector<8x1xf32>
    %47 = vector.broadcast %46 : vector<8x1xf32> to vector<8x8xf32>
    %48 = arith.subf %44, %47 : vector<8x8xf32>
    %49 = math.exp %48 : vector<8x8xf32>
    %cst_21 = arith.constant dense<0.000000e+00> : vector<8xf32>
    %50 = vector.multi_reduction <add>, %49, %cst_21 [1] : vector<8x8xf32> to vector<8xf32>
    %51 = vector.shape_cast %50 : vector<8xf32> to vector<8x1xf32>
    %52 = tpu.reciprocal %51 {approx = true} : vector<8x1xf32> -> vector<8x1xf32>
    %53 = vector.broadcast %52 : vector<8x1xf32> to vector<8x8xf32>
    %54 = arith.mulf %49, %53 : vector<8x8xf32>
    %cst_22 = arith.constant dense<0.000000e+00> : vector<8x16xf32>
    %55 = tpu.matmul %54, %39, %cst_22 {dimension_numbers = #tpu.dot_dimension_numbers<[1], [0], [0], [1], [0, 0, 1, 1], [], []>} : vector<8x8xf32>, vector<8x16xf32>, vector<8x16xf32> -> vector<8x16xf32>
    %56 = vector.extract_strided_slice %33 {offsets = [0, 16], sizes = [8, 16], strides = [1, 1]} : vector<16x32xf32> to vector<8x16xf32>
    %57 = vector.extract_strided_slice %34 {offsets = [0, 16], sizes = [8, 16], strides = [1, 1]} : vector<16x32xf32> to vector<8x16xf32>
    %58 = vector.extract_strided_slice %35 {offsets = [0, 16], sizes = [8, 16], strides = [1, 1]} : vector<16x32xf32> to vector<8x16xf32>
    %cst_23 = arith.constant dense<0.000000e+00> : vector<8x8xf32>
    %59 = tpu.matmul %56, %57, %cst_23 {dimension_numbers = #tpu.dot_dimension_numbers<[1], [1], [0], [0], [0, 0, 1, 0], [], []>} : vector<8x16xf32>, vector<8x16xf32>, vector<8x8xf32> -> vector<8x8xf32>
    %cst_24 = arith.constant 2.500000e-01 : f32
    %60 = vector.broadcast %cst_24 : f32 to vector<8x8xf32>
    %61 = arith.mulf %59, %60 : vector<8x8xf32>
    %62 = vector.broadcast %36 : vector<1x8xf32> to vector<8x8xf32>
    %63 = arith.addf %61, %62 : vector<8x8xf32>
    %cst_25 = arith.constant dense<0xFF800000> : vector<8xf32>
    %64 = vector.multi_reduction <maximumf>, %63, %cst_25 [1] : vector<8x8xf32> to vector<8xf32>
    %65 = vector.shape_cast %64 : vector<8xf32> to vector<8x1xf32>
    %66 = vector.broadcast %65 : vector<8x1xf32> to vector<8x8xf32>
    %67 = arith.subf %63, %66 : vector<8x8xf32>
    %68 = math.exp %67 : vector<8x8xf32>
    %cst_26 = arith.constant dense<0.000000e+00> : vector<8xf32>
    %69 = vector.multi_reduction <add>, %68, %cst_26 [1] : vector<8x8xf32> to vector<8xf32>
    %70 = vector.shape_cast %69 : vector<8xf32> to vector<8x1xf32>
    %71 = tpu.reciprocal %70 {approx = true} : vector<8x1xf32> -> vector<8x1xf32>
    %72 = vector.broadcast %71 : vector<8x1xf32> to vector<8x8xf32>
    %73 = arith.mulf %68, %72 : vector<8x8xf32>
    %cst_27 = arith.constant dense<0.000000e+00> : vector<8x16xf32>
    %74 = tpu.matmul %73, %58, %cst_27 {dimension_numbers = #tpu.dot_dimension_numbers<[1], [0], [0], [1], [0, 0, 1, 1], [], []>} : vector<8x8xf32>, vector<8x16xf32>, vector<8x16xf32> -> vector<8x16xf32>
    %75 = tpu.concatenate %55, %74 in 1 : vector<8x16xf32>, vector<8x16xf32> -> vector<8x32xf32>
    %76 = vector.extract_strided_slice %0 {offsets = [1, 0], sizes = [1, 8], strides = [1, 1]} : vector<2x8xf32> to vector<1x8xf32>
    %77 = vector.extract_strided_slice %33 {offsets = [8, 0], sizes = [8, 16], strides = [1, 1]} : vector<16x32xf32> to vector<8x16xf32>
    %78 = vector.extract_strided_slice %34 {offsets = [8, 0], sizes = [8, 16], strides = [1, 1]} : vector<16x32xf32> to vector<8x16xf32>
    %79 = vector.extract_strided_slice %35 {offsets = [8, 0], sizes = [8, 16], strides = [1, 1]} : vector<16x32xf32> to vector<8x16xf32>
    %cst_28 = arith.constant dense<0.000000e+00> : vector<8x8xf32>
    %80 = tpu.matmul %77, %78, %cst_28 {dimension_numbers = #tpu.dot_dimension_numbers<[1], [1], [0], [0], [0, 0, 1, 0], [], []>} : vector<8x16xf32>, vector<8x16xf32>, vector<8x8xf32> -> vector<8x8xf32>
    %cst_29 = arith.constant 2.500000e-01 : f32
    %81 = vector.broadcast %cst_29 : f32 to vector<8x8xf32>
    %82 = arith.mulf %80, %81 : vector<8x8xf32>
    %83 = vector.broadcast %76 : vector<1x8xf32> to vector<8x8xf32>
    %84 = arith.addf %82, %83 : vector<8x8xf32>
    %cst_30 = arith.constant dense<0xFF800000> : vector<8xf32>
    %85 = vector.multi_reduction <maximumf>, %84, %cst_30 [1] : vector<8x8xf32> to vector<8xf32>
    %86 = vector.shape_cast %85 : vector<8xf32> to vector<8x1xf32>
    %87 = vector.broadcast %86 : vector<8x1xf32> to vector<8x8xf32>
    %88 = arith.subf %84, %87 : vector<8x8xf32>
    %89 = math.exp %88 : vector<8x8xf32>
    %cst_31 = arith.constant dense<0.000000e+00> : vector<8xf32>
    %90 = vector.multi_reduction <add>, %89, %cst_31 [1] : vector<8x8xf32> to vector<8xf32>
    %91 = vector.shape_cast %90 : vector<8xf32> to vector<8x1xf32>
    %92 = tpu.reciprocal %91 {approx = true} : vector<8x1xf32> -> vector<8x1xf32>
    %93 = vector.broadcast %92 : vector<8x1xf32> to vector<8x8xf32>
    %94 = arith.mulf %89, %93 : vector<8x8xf32>
    %cst_32 = arith.constant dense<0.000000e+00> : vector<8x16xf32>
    %95 = tpu.matmul %94, %79, %cst_32 {dimension_numbers = #tpu.dot_dimension_numbers<[1], [0], [0], [1], [0, 0, 1, 1], [], []>} : vector<8x8xf32>, vector<8x16xf32>, vector<8x16xf32> -> vector<8x16xf32>
    %96 = vector.extract_strided_slice %33 {offsets = [8, 16], sizes = [8, 16], strides = [1, 1]} : vector<16x32xf32> to vector<8x16xf32>
    %97 = vector.extract_strided_slice %34 {offsets = [8, 16], sizes = [8, 16], strides = [1, 1]} : vector<16x32xf32> to vector<8x16xf32>
    %98 = vector.extract_strided_slice %35 {offsets = [8, 16], sizes = [8, 16], strides = [1, 1]} : vector<16x32xf32> to vector<8x16xf32>
    %cst_33 = arith.constant dense<0.000000e+00> : vector<8x8xf32>
    %99 = tpu.matmul %96, %97, %cst_33 {dimension_numbers = #tpu.dot_dimension_numbers<[1], [1], [0], [0], [0, 0, 1, 0], [], []>} : vector<8x16xf32>, vector<8x16xf32>, vector<8x8xf32> -> vector<8x8xf32>
    %cst_34 = arith.constant 2.500000e-01 : f32
    %100 = vector.broadcast %cst_34 : f32 to vector<8x8xf32>
    %101 = arith.mulf %99, %100 : vector<8x8xf32>
    %102 = vector.broadcast %76 : vector<1x8xf32> to vector<8x8xf32>
    %103 = arith.addf %101, %102 : vector<8x8xf32>
    %cst_35 = arith.constant dense<0xFF800000> : vector<8xf32>
    %104 = vector.multi_reduction <maximumf>, %103, %cst_35 [1] : vector<8x8xf32> to vector<8xf32>
    %105 = vector.shape_cast %104 : vector<8xf32> to vector<8x1xf32>
    %106 = vector.broadcast %105 : vector<8x1xf32> to vector<8x8xf32>
    %107 = arith.subf %103, %106 : vector<8x8xf32>
    %108 = math.exp %107 : vector<8x8xf32>
    %cst_36 = arith.constant dense<0.000000e+00> : vector<8xf32>
    %109 = vector.multi_reduction <add>, %108, %cst_36 [1] : vector<8x8xf32> to vector<8xf32>
    %110 = vector.shape_cast %109 : vector<8xf32> to vector<8x1xf32>
    %111 = tpu.reciprocal %110 {approx = true} : vector<8x1xf32> -> vector<8x1xf32>
    %112 = vector.broadcast %111 : vector<8x1xf32> to vector<8x8xf32>
    %113 = arith.mulf %108, %112 : vector<8x8xf32>
    %cst_37 = arith.constant dense<0.000000e+00> : vector<8x16xf32>
    %114 = tpu.matmul %113, %98, %cst_37 {dimension_numbers = #tpu.dot_dimension_numbers<[1], [0], [0], [1], [0, 0, 1, 1], [], []>} : vector<8x8xf32>, vector<8x16xf32>, vector<8x16xf32> -> vector<8x16xf32>
    %115 = tpu.concatenate %95, %114 in 1 : vector<8x16xf32>, vector<8x16xf32> -> vector<8x32xf32>
    %116 = tpu.concatenate %75, %115 in 0 : vector<8x32xf32>, vector<8x32xf32> -> vector<16x32xf32>
    %c0_38 = arith.constant 0 : index
    %c0_39 = arith.constant 0 : index
    %c0_40 = arith.constant 0 : index
    %117 = vector.load %arg6[%c0_38, %c0_39, %c0_40] : memref<2x32x32xf32, #tpu.memory_space<vmem>>, vector<1x32x32xf32>
    %118 = vector.shape_cast %117 : vector<1x32x32xf32> to vector<32x32xf32>
    %cst_41 = arith.constant dense<0.000000e+00> : vector<16x32xf32>
    %119 = tpu.matmul %116, %118, %cst_41 {dimension_numbers = #tpu.dot_dimension_numbers<[1], [0], [0], [1], [0, 0, 1, 1], [], []>} : vector<16x32xf32>, vector<32x32xf32>, vector<16x32xf32> -> vector<16x32xf32>
    %c0_42 = arith.constant 0 : index
    %c0_43 = arith.constant 0 : index
    %c0_44 = arith.constant 0 : index
    %120 = vector.load %arg7[%c0_42, %c0_43, %c0_44] : memref<2x1x32xf32, #tpu.memory_space<vmem>>, vector<1x1x32xf32>
    %121 = vector.shape_cast %120 : vector<1x1x32xf32> to vector<1x32xf32>
    %122 = vector.broadcast %121 : vector<1x32xf32> to vector<16x32xf32>
    %123 = arith.addf %119, %122 : vector<16x32xf32>
    %124 = arith.addf %25, %123 : vector<16x32xf32>
    %c0_45 = arith.constant 0 : index
    %c0_46 = arith.constant 0 : index
    %c0_47 = arith.constant 0 : index
    %125 = vector.load %arg8[%c0_45, %c0_46, %c0_47] : memref<2x1x32xf32, #tpu.memory_space<vmem>>, vector<1x1x32xf32>
    %126 = vector.shape_cast %125 : vector<1x1x32xf32> to vector<1x32xf32>
    %c0_48 = arith.constant 0 : index
    %c0_49 = arith.constant 0 : index
    %c0_50 = arith.constant 0 : index
    %127 = vector.load %arg9[%c0_48, %c0_49, %c0_50] : memref<2x1x32xf32, #tpu.memory_space<vmem>>, vector<1x1x32xf32>
    %128 = vector.shape_cast %127 : vector<1x1x32xf32> to vector<1x32xf32>
    %cst_51 = arith.constant dense<0.000000e+00> : vector<16xf32>
    %129 = vector.multi_reduction <add>, %124, %cst_51 [1] : vector<16x32xf32> to vector<16xf32>
    %130 = vector.shape_cast %129 : vector<16xf32> to vector<16x1xf32>
    %cst_52 = arith.constant 3.200000e+01 : f32
    %131 = vector.broadcast %cst_52 : f32 to vector<16x1xf32>
    %132 = arith.divf %130, %131 : vector<16x1xf32>
    %133 = vector.broadcast %132 : vector<16x1xf32> to vector<16x32xf32>
    %134 = arith.subf %124, %133 : vector<16x32xf32>
    %135 = arith.mulf %134, %134 : vector<16x32xf32>
    %cst_53 = arith.constant dense<0.000000e+00> : vector<16xf32>
    %136 = vector.multi_reduction <add>, %135, %cst_53 [1] : vector<16x32xf32> to vector<16xf32>
    %137 = vector.shape_cast %136 : vector<16xf32> to vector<16x1xf32>
    %cst_54 = arith.constant 3.200000e+01 : f32
    %138 = vector.broadcast %cst_54 : f32 to vector<16x1xf32>
    %139 = arith.divf %137, %138 : vector<16x1xf32>
    %140 = vector.broadcast %132 : vector<16x1xf32> to vector<16x32xf32>
    %141 = arith.subf %124, %140 : vector<16x32xf32>
    %cst_55 = arith.constant 9.99999996E-13 : f32
    %142 = vector.broadcast %cst_55 : f32 to vector<16x1xf32>
    %143 = arith.addf %139, %142 : vector<16x1xf32>
    %144 = math.rsqrt %143 : vector<16x1xf32>
    %145 = vector.broadcast %144 : vector<16x1xf32> to vector<16x32xf32>
    %146 = arith.mulf %141, %145 : vector<16x32xf32>
    %147 = vector.broadcast %126 : vector<1x32xf32> to vector<16x32xf32>
    %148 = arith.mulf %146, %147 : vector<16x32xf32>
    %149 = vector.broadcast %128 : vector<1x32xf32> to vector<16x32xf32>
    %150 = arith.addf %148, %149 : vector<16x32xf32>
    %c0_56 = arith.constant 0 : index
    %c0_57 = arith.constant 0 : index
    %c0_58 = arith.constant 0 : index
    %151 = vector.load %arg10[%c0_56, %c0_57, %c0_58] : memref<2x32x64xf32, #tpu.memory_space<vmem>>, vector<1x32x64xf32>
    %152 = vector.shape_cast %151 : vector<1x32x64xf32> to vector<32x64xf32>
    %cst_59 = arith.constant dense<0.000000e+00> : vector<16x64xf32>
    %153 = tpu.matmul %150, %152, %cst_59 {dimension_numbers = #tpu.dot_dimension_numbers<[1], [0], [0], [1], [0, 0, 1, 1], [], []>} : vector<16x32xf32>, vector<32x64xf32>, vector<16x64xf32> -> vector<16x64xf32>
    %c0_60 = arith.constant 0 : index
    %c0_61 = arith.constant 0 : index
    %c0_62 = arith.constant 0 : index
    %154 = vector.load %arg11[%c0_60, %c0_61, %c0_62] : memref<2x1x64xf32, #tpu.memory_space<vmem>>, vector<1x1x64xf32>
    %155 = vector.shape_cast %154 : vector<1x1x64xf32> to vector<1x64xf32>
    %156 = vector.broadcast %155 : vector<1x64xf32> to vector<16x64xf32>
    %157 = arith.addf %153, %156 : vector<16x64xf32>
    %cst_63 = arith.constant 5.000000e-01 : f32
    %158 = vector.broadcast %cst_63 : f32 to vector<16x64xf32>
    %159 = arith.mulf %158, %157 : vector<16x64xf32>
    %cst_64 = arith.constant 4.471500e-02 : f32
    %160 = vector.broadcast %cst_64 : f32 to vector<16x64xf32>
    %161 = arith.mulf %160, %157 : vector<16x64xf32>
    %162 = arith.mulf %161, %157 : vector<16x64xf32>
    %163 = arith.mulf %162, %157 : vector<16x64xf32>
    %164 = arith.addf %157, %163 : vector<16x64xf32>
    %cst_65 = arith.constant 0.797884583 : f32
    %165 = vector.broadcast %cst_65 : f32 to vector<16x64xf32>
    %166 = arith.mulf %165, %164 : vector<16x64xf32>
    %167 = math.tanh %166 : vector<16x64xf32>
    %cst_66 = arith.constant 1.000000e+00 : f32
    %168 = vector.broadcast %cst_66 : f32 to vector<16x64xf32>
    %169 = arith.addf %168, %167 : vector<16x64xf32>
    %170 = arith.mulf %159, %169 : vector<16x64xf32>
    %c0_67 = arith.constant 0 : index
    %c0_68 = arith.constant 0 : index
    %c0_69 = arith.constant 0 : index
    %171 = vector.load %arg12[%c0_67, %c0_68, %c0_69] : memref<2x64x32xf32, #tpu.memory_space<vmem>>, vector<1x64x32xf32>
    %172 = vector.shape_cast %171 : vector<1x64x32xf32> to vector<64x32xf32>
    %cst_70 = arith.constant dense<0.000000e+00> : vector<16x32xf32>
    %173 = tpu.matmul %170, %172, %cst_70 {dimension_numbers = #tpu.dot_dimension_numbers<[1], [0], [0], [1], [0, 0, 1, 1], [], []>} : vector<16x64xf32>, vector<64x32xf32>, vector<16x32xf32> -> vector<16x32xf32>
    %c0_71 = arith.constant 0 : index
    %c0_72 = arith.constant 0 : index
    %c0_73 = arith.constant 0 : index
    %174 = vector.load %arg13[%c0_71, %c0_72, %c0_73] : memref<2x1x32xf32, #tpu.memory_space<vmem>>, vector<1x1x32xf32>
    %175 = vector.shape_cast %174 : vector<1x1x32xf32> to vector<1x32xf32>
    %176 = vector.broadcast %175 : vector<1x32xf32> to vector<16x32xf32>
    %177 = arith.addf %173, %176 : vector<16x32xf32>
    %178 = arith.addf %150, %177 : vector<16x32xf32>
    %c0_74 = arith.constant 0 : index
    %c0_75 = arith.constant 0 : index
    %c0_76 = arith.constant 0 : index
    %179 = vector.load %arg14[%c0_74, %c0_75, %c0_76] : memref<2x1x32xf32, #tpu.memory_space<vmem>>, vector<1x1x32xf32>
    %180 = vector.shape_cast %179 : vector<1x1x32xf32> to vector<1x32xf32>
    %c0_77 = arith.constant 0 : index
    %c0_78 = arith.constant 0 : index
    %c0_79 = arith.constant 0 : index
    %181 = vector.load %arg15[%c0_77, %c0_78, %c0_79] : memref<2x1x32xf32, #tpu.memory_space<vmem>>, vector<1x1x32xf32>
    %182 = vector.shape_cast %181 : vector<1x1x32xf32> to vector<1x32xf32>
    %cst_80 = arith.constant dense<0.000000e+00> : vector<16xf32>
    %183 = vector.multi_reduction <add>, %178, %cst_80 [1] : vector<16x32xf32> to vector<16xf32>
    %184 = vector.shape_cast %183 : vector<16xf32> to vector<16x1xf32>
    %cst_81 = arith.constant 3.200000e+01 : f32
    %185 = vector.broadcast %cst_81 : f32 to vector<16x1xf32>
    %186 = arith.divf %184, %185 : vector<16x1xf32>
    %187 = vector.broadcast %186 : vector<16x1xf32> to vector<16x32xf32>
    %188 = arith.subf %178, %187 : vector<16x32xf32>
    %189 = arith.mulf %188, %188 : vector<16x32xf32>
    %cst_82 = arith.constant dense<0.000000e+00> : vector<16xf32>
    %190 = vector.multi_reduction <add>, %189, %cst_82 [1] : vector<16x32xf32> to vector<16xf32>
    %191 = vector.shape_cast %190 : vector<16xf32> to vector<16x1xf32>
    %cst_83 = arith.constant 3.200000e+01 : f32
    %192 = vector.broadcast %cst_83 : f32 to vector<16x1xf32>
    %193 = arith.divf %191, %192 : vector<16x1xf32>
    %194 = vector.broadcast %186 : vector<16x1xf32> to vector<16x32xf32>
    %195 = arith.subf %178, %194 : vector<16x32xf32>
    %cst_84 = arith.constant 9.99999996E-13 : f32
    %196 = vector.broadcast %cst_84 : f32 to vector<16x1xf32>
    %197 = arith.addf %193, %196 : vector<16x1xf32>
    %198 = math.rsqrt %197 : vector<16x1xf32>
    %199 = vector.broadcast %198 : vector<16x1xf32> to vector<16x32xf32>
    %200 = arith.mulf %195, %199 : vector<16x32xf32>
    %201 = vector.broadcast %180 : vector<1x32xf32> to vector<16x32xf32>
    %202 = arith.mulf %200, %201 : vector<16x32xf32>
    %203 = vector.broadcast %182 : vector<1x32xf32> to vector<16x32xf32>
    %204 = arith.addf %202, %203 : vector<16x32xf32>
    %c1 = arith.constant 1 : index
    %c0_85 = arith.constant 0 : index
    %c0_86 = arith.constant 0 : index
    %205 = vector.load %arg4[%c1, %c0_85, %c0_86] : memref<2x32x96xf32, #tpu.memory_space<vmem>>, vector<1x32x96xf32>
    %206 = vector.shape_cast %205 : vector<1x32x96xf32> to vector<32x96xf32>
    %cst_87 = arith.constant dense<0.000000e+00> : vector<16x96xf32>
    %207 = tpu.matmul %204, %206, %cst_87 {dimension_numbers = #tpu.dot_dimension_numbers<[1], [0], [0], [1], [0, 0, 1, 1], [], []>} : vector<16x32xf32>, vector<32x96xf32>, vector<16x96xf32> -> vector<16x96xf32>
    %c1_88 = arith.constant 1 : index
    %c0_89 = arith.constant 0 : index
    %c0_90 = arith.constant 0 : index
    %208 = vector.load %arg5[%c1_88, %c0_89, %c0_90] : memref<2x1x96xf32, #tpu.memory_space<vmem>>, vector<1x1x96xf32>
    %209 = vector.shape_cast %208 : vector<1x1x96xf32> to vector<1x96xf32>
    %210 = vector.broadcast %209 : vector<1x96xf32> to vector<16x96xf32>
    %211 = arith.addf %207, %210 : vector<16x96xf32>
    %212 = vector.extract_strided_slice %211 {offsets = [0, 0], sizes = [16, 32], strides = [1, 1]} : vector<16x96xf32> to vector<16x32xf32>
    %213 = vector.extract_strided_slice %211 {offsets = [0, 32], sizes = [16, 32], strides = [1, 1]} : vector<16x96xf32> to vector<16x32xf32>
    %214 = vector.extract_strided_slice %211 {offsets = [0, 64], sizes = [16, 32], strides = [1, 1]} : vector<16x96xf32> to vector<16x32xf32>
    %215 = vector.extract_strided_slice %0 {offsets = [0, 0], sizes = [1, 8], strides = [1, 1]} : vector<2x8xf32> to vector<1x8xf32>
    %216 = vector.extract_strided_slice %212 {offsets = [0, 0], sizes = [8, 16], strides = [1, 1]} : vector<16x32xf32> to vector<8x16xf32>
    %217 = vector.extract_strided_slice %213 {offsets = [0, 0], sizes = [8, 16], strides = [1, 1]} : vector<16x32xf32> to vector<8x16xf32>
    %218 = vector.extract_strided_slice %214 {offsets = [0, 0], sizes = [8, 16], strides = [1, 1]} : vector<16x32xf32> to vector<8x16xf32>
    %cst_91 = arith.constant dense<0.000000e+00> : vector<8x8xf32>
    %219 = tpu.matmul %216, %217, %cst_91 {dimension_numbers = #tpu.dot_dimension_numbers<[1], [1], [0], [0], [0, 0, 1, 0], [], []>} : vector<8x16xf32>, vector<8x16xf32>, vector<8x8xf32> -> vector<8x8xf32>
    %cst_92 = arith.constant 2.500000e-01 : f32
    %220 = vector.broadcast %cst_92 : f32 to vector<8x8xf32>
    %221 = arith.mulf %219, %220 : vector<8x8xf32>
    %222 = vector.broadcast %215 : vector<1x8xf32> to vector<8x8xf32>
    %223 = arith.addf %221, %222 : vector<8x8xf32>
    %cst_93 = arith.constant dense<0xFF800000> : vector<8xf32>
    %224 = vector.multi_reduction <maximumf>, %223, %cst_93 [1] : vector<8x8xf32> to vector<8xf32>
    %225 = vector.shape_cast %224 : vector<8xf32> to vector<8x1xf32>
    %226 = vector.broadcast %225 : vector<8x1xf32> to vector<8x8xf32>
    %227 = arith.subf %223, %226 : vector<8x8xf32>
    %228 = math.exp %227 : vector<8x8xf32>
    %cst_94 = arith.constant dense<0.000000e+00> : vector<8xf32>
    %229 = vector.multi_reduction <add>, %228, %cst_94 [1] : vector<8x8xf32> to vector<8xf32>
    %230 = vector.shape_cast %229 : vector<8xf32> to vector<8x1xf32>
    %231 = tpu.reciprocal %230 {approx = true} : vector<8x1xf32> -> vector<8x1xf32>
    %232 = vector.broadcast %231 : vector<8x1xf32> to vector<8x8xf32>
    %233 = arith.mulf %228, %232 : vector<8x8xf32>
    %cst_95 = arith.constant dense<0.000000e+00> : vector<8x16xf32>
    %234 = tpu.matmul %233, %218, %cst_95 {dimension_numbers = #tpu.dot_dimension_numbers<[1], [0], [0], [1], [0, 0, 1, 1], [], []>} : vector<8x8xf32>, vector<8x16xf32>, vector<8x16xf32> -> vector<8x16xf32>
    %235 = vector.extract_strided_slice %212 {offsets = [0, 16], sizes = [8, 16], strides = [1, 1]} : vector<16x32xf32> to vector<8x16xf32>
    %236 = vector.extract_strided_slice %213 {offsets = [0, 16], sizes = [8, 16], strides = [1, 1]} : vector<16x32xf32> to vector<8x16xf32>
    %237 = vector.extract_strided_slice %214 {offsets = [0, 16], sizes = [8, 16], strides = [1, 1]} : vector<16x32xf32> to vector<8x16xf32>
    %cst_96 = arith.constant dense<0.000000e+00> : vector<8x8xf32>
    %238 = tpu.matmul %235, %236, %cst_96 {dimension_numbers = #tpu.dot_dimension_numbers<[1], [1], [0], [0], [0, 0, 1, 0], [], []>} : vector<8x16xf32>, vector<8x16xf32>, vector<8x8xf32> -> vector<8x8xf32>
    %cst_97 = arith.constant 2.500000e-01 : f32
    %239 = vector.broadcast %cst_97 : f32 to vector<8x8xf32>
    %240 = arith.mulf %238, %239 : vector<8x8xf32>
    %241 = vector.broadcast %215 : vector<1x8xf32> to vector<8x8xf32>
    %242 = arith.addf %240, %241 : vector<8x8xf32>
    %cst_98 = arith.constant dense<0xFF800000> : vector<8xf32>
    %243 = vector.multi_reduction <maximumf>, %242, %cst_98 [1] : vector<8x8xf32> to vector<8xf32>
    %244 = vector.shape_cast %243 : vector<8xf32> to vector<8x1xf32>
    %245 = vector.broadcast %244 : vector<8x1xf32> to vector<8x8xf32>
    %246 = arith.subf %242, %245 : vector<8x8xf32>
    %247 = math.exp %246 : vector<8x8xf32>
    %cst_99 = arith.constant dense<0.000000e+00> : vector<8xf32>
    %248 = vector.multi_reduction <add>, %247, %cst_99 [1] : vector<8x8xf32> to vector<8xf32>
    %249 = vector.shape_cast %248 : vector<8xf32> to vector<8x1xf32>
    %250 = tpu.reciprocal %249 {approx = true} : vector<8x1xf32> -> vector<8x1xf32>
    %251 = vector.broadcast %250 : vector<8x1xf32> to vector<8x8xf32>
    %252 = arith.mulf %247, %251 : vector<8x8xf32>
    %cst_100 = arith.constant dense<0.000000e+00> : vector<8x16xf32>
    %253 = tpu.matmul %252, %237, %cst_100 {dimension_numbers = #tpu.dot_dimension_numbers<[1], [0], [0], [1], [0, 0, 1, 1], [], []>} : vector<8x8xf32>, vector<8x16xf32>, vector<8x16xf32> -> vector<8x16xf32>
    %254 = tpu.concatenate %234, %253 in 1 : vector<8x16xf32>, vector<8x16xf32> -> vector<8x32xf32>
    %255 = vector.extract_strided_slice %0 {offsets = [1, 0], sizes = [1, 8], strides = [1, 1]} : vector<2x8xf32> to vector<1x8xf32>
    %256 = vector.extract_strided_slice %212 {offsets = [8, 0], sizes = [8, 16], strides = [1, 1]} : vector<16x32xf32> to vector<8x16xf32>
    %257 = vector.extract_strided_slice %213 {offsets = [8, 0], sizes = [8, 16], strides = [1, 1]} : vector<16x32xf32> to vector<8x16xf32>
    %258 = vector.extract_strided_slice %214 {offsets = [8, 0], sizes = [8, 16], strides = [1, 1]} : vector<16x32xf32> to vector<8x16xf32>
    %cst_101 = arith.constant dense<0.000000e+00> : vector<8x8xf32>
    %259 = tpu.matmul %256, %257, %cst_101 {dimension_numbers = #tpu.dot_dimension_numbers<[1], [1], [0], [0], [0, 0, 1, 0], [], []>} : vector<8x16xf32>, vector<8x16xf32>, vector<8x8xf32> -> vector<8x8xf32>
    %cst_102 = arith.constant 2.500000e-01 : f32
    %260 = vector.broadcast %cst_102 : f32 to vector<8x8xf32>
    %261 = arith.mulf %259, %260 : vector<8x8xf32>
    %262 = vector.broadcast %255 : vector<1x8xf32> to vector<8x8xf32>
    %263 = arith.addf %261, %262 : vector<8x8xf32>
    %cst_103 = arith.constant dense<0xFF800000> : vector<8xf32>
    %264 = vector.multi_reduction <maximumf>, %263, %cst_103 [1] : vector<8x8xf32> to vector<8xf32>
    %265 = vector.shape_cast %264 : vector<8xf32> to vector<8x1xf32>
    %266 = vector.broadcast %265 : vector<8x1xf32> to vector<8x8xf32>
    %267 = arith.subf %263, %266 : vector<8x8xf32>
    %268 = math.exp %267 : vector<8x8xf32>
    %cst_104 = arith.constant dense<0.000000e+00> : vector<8xf32>
    %269 = vector.multi_reduction <add>, %268, %cst_104 [1] : vector<8x8xf32> to vector<8xf32>
    %270 = vector.shape_cast %269 : vector<8xf32> to vector<8x1xf32>
    %271 = tpu.reciprocal %270 {approx = true} : vector<8x1xf32> -> vector<8x1xf32>
    %272 = vector.broadcast %271 : vector<8x1xf32> to vector<8x8xf32>
    %273 = arith.mulf %268, %272 : vector<8x8xf32>
    %cst_105 = arith.constant dense<0.000000e+00> : vector<8x16xf32>
    %274 = tpu.matmul %273, %258, %cst_105 {dimension_numbers = #tpu.dot_dimension_numbers<[1], [0], [0], [1], [0, 0, 1, 1], [], []>} : vector<8x8xf32>, vector<8x16xf32>, vector<8x16xf32> -> vector<8x16xf32>
    %275 = vector.extract_strided_slice %212 {offsets = [8, 16], sizes = [8, 16], strides = [1, 1]} : vector<16x32xf32> to vector<8x16xf32>
    %276 = vector.extract_strided_slice %213 {offsets = [8, 16], sizes = [8, 16], strides = [1, 1]} : vector<16x32xf32> to vector<8x16xf32>
    %277 = vector.extract_strided_slice %214 {offsets = [8, 16], sizes = [8, 16], strides = [1, 1]} : vector<16x32xf32> to vector<8x16xf32>
    %cst_106 = arith.constant dense<0.000000e+00> : vector<8x8xf32>
    %278 = tpu.matmul %275, %276, %cst_106 {dimension_numbers = #tpu.dot_dimension_numbers<[1], [1], [0], [0], [0, 0, 1, 0], [], []>} : vector<8x16xf32>, vector<8x16xf32>, vector<8x8xf32> -> vector<8x8xf32>
    %cst_107 = arith.constant 2.500000e-01 : f32
    %279 = vector.broadcast %cst_107 : f32 to vector<8x8xf32>
    %280 = arith.mulf %278, %279 : vector<8x8xf32>
    %281 = vector.broadcast %255 : vector<1x8xf32> to vector<8x8xf32>
    %282 = arith.addf %280, %281 : vector<8x8xf32>
    %cst_108 = arith.constant dense<0xFF800000> : vector<8xf32>
    %283 = vector.multi_reduction <maximumf>, %282, %cst_108 [1] : vector<8x8xf32> to vector<8xf32>
    %284 = vector.shape_cast %283 : vector<8xf32> to vector<8x1xf32>
    %285 = vector.broadcast %284 : vector<8x1xf32> to vector<8x8xf32>
    %286 = arith.subf %282, %285 : vector<8x8xf32>
    %287 = math.exp %286 : vector<8x8xf32>
    %cst_109 = arith.constant dense<0.000000e+00> : vector<8xf32>
    %288 = vector.multi_reduction <add>, %287, %cst_109 [1] : vector<8x8xf32> to vector<8xf32>
    %289 = vector.shape_cast %288 : vector<8xf32> to vector<8x1xf32>
    %290 = tpu.reciprocal %289 {approx = true} : vector<8x1xf32> -> vector<8x1xf32>
    %291 = vector.broadcast %290 : vector<8x1xf32> to vector<8x8xf32>
    %292 = arith.mulf %287, %291 : vector<8x8xf32>
    %cst_110 = arith.constant dense<0.000000e+00> : vector<8x16xf32>
    %293 = tpu.matmul %292, %277, %cst_110 {dimension_numbers = #tpu.dot_dimension_numbers<[1], [0], [0], [1], [0, 0, 1, 1], [], []>} : vector<8x8xf32>, vector<8x16xf32>, vector<8x16xf32> -> vector<8x16xf32>
    %294 = tpu.concatenate %274, %293 in 1 : vector<8x16xf32>, vector<8x16xf32> -> vector<8x32xf32>
    %295 = tpu.concatenate %254, %294 in 0 : vector<8x32xf32>, vector<8x32xf32> -> vector<16x32xf32>
    %c1_111 = arith.constant 1 : index
    %c0_112 = arith.constant 0 : index
    %c0_113 = arith.constant 0 : index
    %296 = vector.load %arg6[%c1_111, %c0_112, %c0_113] : memref<2x32x32xf32, #tpu.memory_space<vmem>>, vector<1x32x32xf32>
    %297 = vector.shape_cast %296 : vector<1x32x32xf32> to vector<32x32xf32>
    %cst_114 = arith.constant dense<0.000000e+00> : vector<16x32xf32>
    %298 = tpu.matmul %295, %297, %cst_114 {dimension_numbers = #tpu.dot_dimension_numbers<[1], [0], [0], [1], [0, 0, 1, 1], [], []>} : vector<16x32xf32>, vector<32x32xf32>, vector<16x32xf32> -> vector<16x32xf32>
    %c1_115 = arith.constant 1 : index
    %c0_116 = arith.constant 0 : index
    %c0_117 = arith.constant 0 : index
    %299 = vector.load %arg7[%c1_115, %c0_116, %c0_117] : memref<2x1x32xf32, #tpu.memory_space<vmem>>, vector<1x1x32xf32>
    %300 = vector.shape_cast %299 : vector<1x1x32xf32> to vector<1x32xf32>
    %301 = vector.broadcast %300 : vector<1x32xf32> to vector<16x32xf32>
    %302 = arith.addf %298, %301 : vector<16x32xf32>
    %303 = arith.addf %204, %302 : vector<16x32xf32>
    %c1_118 = arith.constant 1 : index
    %c0_119 = arith.constant 0 : index
    %c0_120 = arith.constant 0 : index
    %304 = vector.load %arg8[%c1_118, %c0_119, %c0_120] : memref<2x1x32xf32, #tpu.memory_space<vmem>>, vector<1x1x32xf32>
    %305 = vector.shape_cast %304 : vector<1x1x32xf32> to vector<1x32xf32>
    %c1_121 = arith.constant 1 : index
    %c0_122 = arith.constant 0 : index
    %c0_123 = arith.constant 0 : index
    %306 = vector.load %arg9[%c1_121, %c0_122, %c0_123] : memref<2x1x32xf32, #tpu.memory_space<vmem>>, vector<1x1x32xf32>
    %307 = vector.shape_cast %306 : vector<1x1x32xf32> to vector<1x32xf32>
    %cst_124 = arith.constant dense<0.000000e+00> : vector<16xf32>
    %308 = vector.multi_reduction <add>, %303, %cst_124 [1] : vector<16x32xf32> to vector<16xf32>
    %309 = vector.shape_cast %308 : vector<16xf32> to vector<16x1xf32>
    %cst_125 = arith.constant 3.200000e+01 : f32
    %310 = vector.broadcast %cst_125 : f32 to vector<16x1xf32>
    %311 = arith.divf %309, %310 : vector<16x1xf32>
    %312 = vector.broadcast %311 : vector<16x1xf32> to vector<16x32xf32>
    %313 = arith.subf %303, %312 : vector<16x32xf32>
    %314 = arith.mulf %313, %313 : vector<16x32xf32>
    %cst_126 = arith.constant dense<0.000000e+00> : vector<16xf32>
    %315 = vector.multi_reduction <add>, %314, %cst_126 [1] : vector<16x32xf32> to vector<16xf32>
    %316 = vector.shape_cast %315 : vector<16xf32> to vector<16x1xf32>
    %cst_127 = arith.constant 3.200000e+01 : f32
    %317 = vector.broadcast %cst_127 : f32 to vector<16x1xf32>
    %318 = arith.divf %316, %317 : vector<16x1xf32>
    %319 = vector.broadcast %311 : vector<16x1xf32> to vector<16x32xf32>
    %320 = arith.subf %303, %319 : vector<16x32xf32>
    %cst_128 = arith.constant 9.99999996E-13 : f32
    %321 = vector.broadcast %cst_128 : f32 to vector<16x1xf32>
    %322 = arith.addf %318, %321 : vector<16x1xf32>
    %323 = math.rsqrt %322 : vector<16x1xf32>
    %324 = vector.broadcast %323 : vector<16x1xf32> to vector<16x32xf32>
    %325 = arith.mulf %320, %324 : vector<16x32xf32>
    %326 = vector.broadcast %305 : vector<1x32xf32> to vector<16x32xf32>
    %327 = arith.mulf %325, %326 : vector<16x32xf32>
    %328 = vector.broadcast %307 : vector<1x32xf32> to vector<16x32xf32>
    %329 = arith.addf %327, %328 : vector<16x32xf32>
    %c1_129 = arith.constant 1 : index
    %c0_130 = arith.constant 0 : index
    %c0_131 = arith.constant 0 : index
    %330 = vector.load %arg10[%c1_129, %c0_130, %c0_131] : memref<2x32x64xf32, #tpu.memory_space<vmem>>, vector<1x32x64xf32>
    %331 = vector.shape_cast %330 : vector<1x32x64xf32> to vector<32x64xf32>
    %cst_132 = arith.constant dense<0.000000e+00> : vector<16x64xf32>
    %332 = tpu.matmul %329, %331, %cst_132 {dimension_numbers = #tpu.dot_dimension_numbers<[1], [0], [0], [1], [0, 0, 1, 1], [], []>} : vector<16x32xf32>, vector<32x64xf32>, vector<16x64xf32> -> vector<16x64xf32>
    %c1_133 = arith.constant 1 : index
    %c0_134 = arith.constant 0 : index
    %c0_135 = arith.constant 0 : index
    %333 = vector.load %arg11[%c1_133, %c0_134, %c0_135] : memref<2x1x64xf32, #tpu.memory_space<vmem>>, vector<1x1x64xf32>
    %334 = vector.shape_cast %333 : vector<1x1x64xf32> to vector<1x64xf32>
    %335 = vector.broadcast %334 : vector<1x64xf32> to vector<16x64xf32>
    %336 = arith.addf %332, %335 : vector<16x64xf32>
    %cst_136 = arith.constant 5.000000e-01 : f32
    %337 = vector.broadcast %cst_136 : f32 to vector<16x64xf32>
    %338 = arith.mulf %337, %336 : vector<16x64xf32>
    %cst_137 = arith.constant 4.471500e-02 : f32
    %339 = vector.broadcast %cst_137 : f32 to vector<16x64xf32>
    %340 = arith.mulf %339, %336 : vector<16x64xf32>
    %341 = arith.mulf %340, %336 : vector<16x64xf32>
    %342 = arith.mulf %341, %336 : vector<16x64xf32>
    %343 = arith.addf %336, %342 : vector<16x64xf32>
    %cst_138 = arith.constant 0.797884583 : f32
    %344 = vector.broadcast %cst_138 : f32 to vector<16x64xf32>
    %345 = arith.mulf %344, %343 : vector<16x64xf32>
    %346 = math.tanh %345 : vector<16x64xf32>
    %cst_139 = arith.constant 1.000000e+00 : f32
    %347 = vector.broadcast %cst_139 : f32 to vector<16x64xf32>
    %348 = arith.addf %347, %346 : vector<16x64xf32>
    %349 = arith.mulf %338, %348 : vector<16x64xf32>
    %c1_140 = arith.constant 1 : index
    %c0_141 = arith.constant 0 : index
    %c0_142 = arith.constant 0 : index
    %350 = vector.load %arg12[%c1_140, %c0_141, %c0_142] : memref<2x64x32xf32, #tpu.memory_space<vmem>>, vector<1x64x32xf32>
    %351 = vector.shape_cast %350 : vector<1x64x32xf32> to vector<64x32xf32>
    %cst_143 = arith.constant dense<0.000000e+00> : vector<16x32xf32>
    %352 = tpu.matmul %349, %351, %cst_143 {dimension_numbers = #tpu.dot_dimension_numbers<[1], [0], [0], [1], [0, 0, 1, 1], [], []>} : vector<16x64xf32>, vector<64x32xf32>, vector<16x32xf32> -> vector<16x32xf32>
    %c1_144 = arith.constant 1 : index
    %c0_145 = arith.constant 0 : index
    %c0_146 = arith.constant 0 : index
    %353 = vector.load %arg13[%c1_144, %c0_145, %c0_146] : memref<2x1x32xf32, #tpu.memory_space<vmem>>, vector<1x1x32xf32>
    %354 = vector.shape_cast %353 : vector<1x1x32xf32> to vector<1x32xf32>
    %355 = vector.broadcast %354 : vector<1x32xf32> to vector<16x32xf32>
    %356 = arith.addf %352, %355 : vector<16x32xf32>
    %357 = arith.addf %329, %356 : vector<16x32xf32>
    %c1_147 = arith.constant 1 : index
    %c0_148 = arith.constant 0 : index
    %c0_149 = arith.constant 0 : index
    %358 = vector.load %arg14[%c1_147, %c0_148, %c0_149] : memref<2x1x32xf32, #tpu.memory_space<vmem>>, vector<1x1x32xf32>
    %359 = vector.shape_cast %358 : vector<1x1x32xf32> to vector<1x32xf32>
    %c1_150 = arith.constant 1 : index
    %c0_151 = arith.constant 0 : index
    %c0_152 = arith.constant 0 : index
    %360 = vector.load %arg15[%c1_150, %c0_151, %c0_152] : memref<2x1x32xf32, #tpu.memory_space<vmem>>, vector<1x1x32xf32>
    %361 = vector.shape_cast %360 : vector<1x1x32xf32> to vector<1x32xf32>
    %cst_153 = arith.constant dense<0.000000e+00> : vector<16xf32>
    %362 = vector.multi_reduction <add>, %357, %cst_153 [1] : vector<16x32xf32> to vector<16xf32>
    %363 = vector.shape_cast %362 : vector<16xf32> to vector<16x1xf32>
    %cst_154 = arith.constant 3.200000e+01 : f32
    %364 = vector.broadcast %cst_154 : f32 to vector<16x1xf32>
    %365 = arith.divf %363, %364 : vector<16x1xf32>
    %366 = vector.broadcast %365 : vector<16x1xf32> to vector<16x32xf32>
    %367 = arith.subf %357, %366 : vector<16x32xf32>
    %368 = arith.mulf %367, %367 : vector<16x32xf32>
    %cst_155 = arith.constant dense<0.000000e+00> : vector<16xf32>
    %369 = vector.multi_reduction <add>, %368, %cst_155 [1] : vector<16x32xf32> to vector<16xf32>
    %370 = vector.shape_cast %369 : vector<16xf32> to vector<16x1xf32>
    %cst_156 = arith.constant 3.200000e+01 : f32
    %371 = vector.broadcast %cst_156 : f32 to vector<16x1xf32>
    %372 = arith.divf %370, %371 : vector<16x1xf32>
    %373 = vector.broadcast %365 : vector<16x1xf32> to vector<16x32xf32>
    %374 = arith.subf %357, %373 : vector<16x32xf32>
    %cst_157 = arith.constant 9.99999996E-13 : f32
    %375 = vector.broadcast %cst_157 : f32 to vector<16x1xf32>
    %376 = arith.addf %372, %375 : vector<16x1xf32>
    %377 = math.rsqrt %376 : vector<16x1xf32>
    %378 = vector.broadcast %377 : vector<16x1xf32> to vector<16x32xf32>
    %379 = arith.mulf %374, %378 : vector<16x32xf32>
    %380 = vector.broadcast %359 : vector<1x32xf32> to vector<16x32xf32>
    %381 = arith.mulf %379, %380 : vector<16x32xf32>
    %382 = vector.broadcast %361 : vector<1x32xf32> to vector<16x32xf32>
    %383 = arith.addf %381, %382 : vector<16x32xf32>
    %384 = vector.extract_strided_slice %383 {offsets = [0, 0], sizes = [1, 32], strides = [1, 1]} : vector<16x32xf32> to vector<1x32xf32>
    %385 = vector.extract_strided_slice %383 {offsets = [8, 0], sizes = [1, 32], strides = [1, 1]} : vector<16x32xf32> to vector<1x32xf32>
    %386 = tpu.concatenate %384, %385 in 0 : vector<1x32xf32>, vector<1x32xf32> -> vector<2x32xf32>
    %c0_158 = arith.constant 0 : index
    %c0_159 = arith.constant 0 : index
    %387 = vector.load %arg16[%c0_158, %c0_159] : memref<32x32xf32, #tpu.memory_space<vmem>>, vector<32x32xf32>
    %cst_160 = arith.constant dense<0.000000e+00> : vector<2x32xf32>
    %388 = tpu.matmul %386, %387, %cst_160 {dimension_numbers = #tpu.dot_dimension_numbers<[1], [0], [0], [1], [0, 0, 1, 1], [], []>} : vector<2x32xf32>, vector<32x32xf32>, vector<2x32xf32> -> vector<2x32xf32>
    %c0_161 = arith.constant 0 : index
    %c0_162 = arith.constant 0 : index
    %389 = vector.load %arg17[%c0_161, %c0_162] : memref<1x32xf32, #tpu.memory_space<vmem>>, vector<1x32xf32>
    %390 = vector.broadcast %389 : vector<1x32xf32> to vector<2x32xf32>
    %391 = arith.addf %388, %390 : vector<2x32xf32>
    %392 = math.tanh %391 : vector<2x32xf32>
    %c0_163 = arith.constant 0 : index
    %c0_164 = arith.constant 0 : index
    %393 = vector.load %arg18[%c0_163, %c0_164] : memref<2x32xf32, #tpu.memory_space<vmem>>, vector<2x32xf32>
    tpu.vector_store %arg18[%c0_163, %c0_164], %392 {strides = array<i32>} : memref<2x32xf32, #tpu.memory_space<vmem>>, vector<2x32xf32>,
    return
  }
}

</mosaic_0001>

<bundles_post_ra>
// kernel: tpu_custom_call.1
= control target key start
LH: loop header
LB: loop body
LE: loop exit
PB: predicated region body
PF: predicated region fallthrough
CT: control target
= control target key end

     0   :  { %s3731_s0 = inlined_call_operand.hbm [shape: f32[16,32], index: 0, kind: input, shape index: {}]   ;;  %s3732_s1 = inlined_call_operand.hbm [shape: f32[2,8], index: 1, kind: input, shape index: {}]   ;;  %s3733_s2 = inlined_call_operand.hbm [shape: f32[1,32], index: 2, kind: input, shape index: {}]   ;;  %s3734_s3 = inlined_call_operand.hbm [shape: f32[1,32], index: 3, kind: input, shape index: {}]   ;;  %s3735_s4 = inlined_call_operand.vmem [shape: f32[2,32,96], index: 4, kind: input, shape index: {}]   ;;  %s3736_s5 = inlined_call_operand.vmem [shape: f32[2,1,96], index: 5, kind: input, shape index: {}]   ;;  %s3737_s6 = inlined_call_operand.vmem [shape: f32[2,32,32], index: 6, kind: input, shape index: {}]   ;;  %s3738_s7 = inlined_call_operand.vmem [shape: f32[2,1,32], index: 7, kind: input, shape index: {}]   ;;  %s3739_s8 = inlined_call_operand.vmem [shape: f32[2,1,32], index: 8, kind: input, shape index: {}]   ;;  %s3740_s9 = inlined_call_operand.vmem [shape: f32[2,1,32], index: 9, kind: input, shape index: {}]   ;;  %s3741_s10 = inlined_call_operand.vmem [shape: f32[2,32,64], index: 10, kind: input, shape index: {}]   ;;  %s3742_s11 = inlined_call_operand.vmem [shape: f32[2,1,64], index: 11, kind: input, shape index: {}]   ;;  %s3743_s12 = inlined_call_operand.vmem [shape: f32[2,64,32], index: 12, kind: input, shape index: {}]   ;;  %s3744_s13 = inlined_call_operand.vmem [shape: f32[2,1,32], index: 13, kind: input, shape index: {}]   ;;  %s3745_s14 = inlined_call_operand.vmem [shape: f32[2,1,32], index: 14, kind: input, shape index: {}]   ;;  %s3746_s15 = inlined_call_operand.vmem [shape: f32[2,1,32], index: 15, kind: input, shape index: {}]   ;;  %s3747_s16 = inlined_call_operand.hbm [shape: f32[32,32], index: 16, kind: input, shape index: {}]   ;;  %s3748_s17 = inlined_call_operand.vmem [shape: f32[1,32], index: 17, kind: input, shape index: {}]   ;;  %s3749_s18 = inlined_call_operand.hbm [shape: f32[2,32], index: 18, kind: output, shape index: {}]  }
   0x1   :  { %3750 = sst [smem:[#allocation16_spill]] %s3731_s0 }
   0x2   :  { %3751 = sst [smem:[#allocation17_spill]] %s3732_s1 }
   0x3   :  { %3752 = sst [smem:[#allocation18_spill]] %s3733_s2 }
   0x4   :  { %23 = vsyncpa [#allocation3], 0 }
   0x5   :  { %24 = vsyncpa [#allocation6], 0 }
   0x6   :  { %25 = vsyncpa [#allocation9], 0 }
   0x7   :  { %26 = vsyncpa [#allocation4], 0  ;;  %s3201_s27 = smov [#allocation5]   ;;  %s3202_s29 = smov [#allocation8]  }
   0x8   :  { %s45_s28 = sshll.u32 %s3201_s27, 4  ;;  %s65_s30 = sshll.u32 %s3202_s29, 4  ;;  %s46_s28 = int_to_ptr.vmem [resolvable:$true] %s45_s28  ;;  %s66_s30 = int_to_ptr.vmem [resolvable:$true] %s65_s30 }
   0x9   :  { %s3081_s0 = scalar_lea.vmem %s46_s28, 32  ;;  %p3086_p1 = scmp.lt.s32.totalorder %s46_s28, %s46_s28 }
   0xa   :  { %p3082_p0 = scmp.ne.s32.totalorder %s46_s28, %s3081_s0  ;;  %p3087_p2 = scmp.lt.s32.totalorder %s3081_s0, %s3081_s0 }
   0xc   :  { %p3088_p3 = por %p3087_p2, %p3086_p1 }
   0xe   :  { %p3089_p4 = pnand %p3088_p3, %p3082_p0 }
  0x10   :  { %3092 = shalt.err (!%p3089_p4)
}
  0x11   :  { %s3753_s20 = sld [smem:[#allocation17_spill]]  ;;  %s3101_s21 = scalar_lea.vmem %s66_s30, 16 }
  0x12   :  { %p3102_p5 = scmp.ne.s32.totalorder %s66_s30, %s3101_s21  ;;  %s3105_s22 = scalar_lea.vmem %s66_s30, 32 }
  0x13   :  { %p3106_p6 = scmp.lt.s32.totalorder %s66_s30, %s66_s30  ;;  %p3107_p7 = scmp.lt.s32.totalorder %s3105_s22, %s3101_s21 }
  0x15   :  { %p3108_p8 = por %p3107_p7, %p3106_p6 }
  0x17   :  { %48 = dma.hbm_to_vmem [thread:$0]  %s3753_s20, 32, %s46_s28, [#allocation6]  }
  0x18   :  { %p3109_p9 = pnand %p3108_p8, %p3102_p5 }
  0x1a   :  { %3112 = shalt.err (!%p3109_p9)
}
  0x1b   :  { %68 = dma.hbm_to_vmem [thread:$0]  %s3734_s3, 16, %s66_s30, [#allocation9]  }
  0x1c   :  { %s3203_s24 = smov [#allocation2]  }
  0x1d   :  { %s32_s25 = sshll.u32 %s3203_s24, 4  ;;  %s33_s25 = int_to_ptr.vmem [resolvable:$true] %s32_s25 }
  0x1e   :  { %s3121_s26 = scalar_lea.vmem %s33_s25, 256  ;;  %p3126_p11 = scmp.lt.s32.totalorder %s33_s25, %s33_s25 }
  0x1f   :  { %p3122_p10 = scmp.ne.s32.totalorder %s33_s25, %s3121_s26  ;;  %p3127_p12 = scmp.lt.s32.totalorder %s3121_s26, %s3121_s26 }
  0x21   :  { %p3128_p13 = por %p3127_p12, %p3126_p11 }
  0x23   :  { %p3129_p0 = pnand %p3128_p13, %p3122_p10 }
  0x25   :  { %3132 = shalt.err (!%p3129_p0)
}
  0x26   :  { %s3204_s27 = smov 128   ;;  %s3205_s28 = smov 8  }
  0x27   :  { %s3754_s19 = sld [smem:[#allocation16_spill]]  ;;  %s3206_s1 = smov [#allocation7]  }
  0x28   :  { %s55_s20 = sshll.u32 %s3206_s1, 4  ;;  %s3207_s3 = smov [#allocation10]   ;;  %s56_s20 = int_to_ptr.vmem [resolvable:$true] %s55_s20 }
  0x29   :  { %s98_s30 = sshll.u32 %s3207_s3, 4  ;;  %s3141_s21 = scalar_lea.vmem %s56_s20, 16  ;;  %s99_s30 = int_to_ptr.vmem [resolvable:$true] %s98_s30 }
  0x2a   :  { %p3142_p1 = scmp.ne.s32.totalorder %s56_s20, %s3141_s21  ;;  %s3145_s22 = scalar_lea.vmem %s56_s20, 32 }
  0x2b   :  { %p3146_p2 = scmp.lt.s32.totalorder %s56_s20, %s56_s20  ;;  %p3147_p3 = scmp.lt.s32.totalorder %s3145_s22, %s3141_s21 }
  0x2d   :  { %38 = dma.hbm_to_vmem [thread:$0]  %s3754_s19, 256, %s33_s25, [#allocation3], %s3204_s27, %s3204_s27, %s3205_s28  }
  0x2e   :  { %p3148_p4 = por %p3147_p3, %p3146_p2 }
  0x30   :  { %p3149_p5 = pnand %p3148_p4, %p3142_p1 }
  0x32   :  { %3152 = shalt.err (!%p3149_p5)
}
  0x33   :  { %s3755_s24 = sld [smem:[#allocation18_spill]]  ;;  %s3161_s26 = scalar_lea.vmem %s99_s30, 512 }
  0x34   :  { %p3162_p6 = scmp.ne.s32.totalorder %s99_s30, %s3161_s26  ;;  %p3166_p7 = scmp.lt.s32.totalorder %s99_s30, %s99_s30 }
  0x35   :  { %p3167_p8 = scmp.lt.s32.totalorder %s3161_s26, %s3161_s26 }
  0x37   :  { %p3168_p9 = por %p3167_p8, %p3166_p7 }
  0x39   :  { %58 = dma.hbm_to_vmem [thread:$0]  %s3755_s24, 16, %s56_s20, [#allocation6]  }
  0x3a   :  { %p3169_p10 = pnand %p3168_p9, %p3162_p6 }
  0x3c   :  { %3172 = shalt.err (!%p3169_p10)
}
  0x3d   :  { %104 = dma.hbm_to_vmem [thread:$0]  %s3747_s16, 512, %s99_s30, [#allocation9], %s3204_s27, %s3204_s27, %s3205_s28  }
  0x3e   :  { %3193 = dma.done.wait [#allocation3], 256  }
  0x3f   :  { %3194 = vsyncadd [#allocation3], 4294967040 }
  0x40   :  { %3195 = dma.done.wait [#allocation6], 48  }
  0x41   :  { %3196 = vsyncadd [#allocation6], 4294967248 }
  0x42   :  { %3197 = dma.done.wait [#allocation9], 528  }
  0x43   :  { %3198 = vsyncadd [#allocation9], 4294966768  ;;  %vm127_vm0 = vcmask 261120   ;;  %v123_v0 = vld [vmem:[#allocation2] sm:$0xff]  ;;  %v124_v1 = vld [vmem:[#allocation2 + $0x8] sm:$0xff]  ;;  %v3208_v34 = vmov 0.0   ;;  %v342_v43 = vlaneseq }
  0x44   :  { %v128_v2 = vsel %vm127_vm0, %v123_v0, 0.0  ;;  %v131_v3 = vsel %vm127_vm0, %v124_v1, 0.0  ;;  %v174_v14 = vld [vmem:[%s3735_s4 + $0x18] sm:$0xff]  ;;  %v173_v15 = vld [vmem:[%s3735_s4 + $0x10] sm:$0xff]  ;;  %v172_v16 = vld [vmem:[%s3735_s4 + $0x8] sm:$0xff]  ;;  %2811 = vmatprep.subr.mxu1 %v3208_v34  ;;  %vm3209_vm1 = vmmov 0  }
  0x45   :  { %129 = vadd.xlane.f32.xlu0 %v128_v2  ;;  %2800 = vmatprep.subr.mxu0 %v174_v14  ;;  %v171_v17 = vld [vmem:[%s3735_s4] sm:$0xff]  ;;  %v2619_v25 = vld [vmem:[#allocation7] ss:$0 sm:$0xff]  ;;  %v2620_v27 = vld [vmem:[#allocation8] ss:$0 sm:$0xff]  ;;  %s3210_s22 = smov 96  }
  0x46   :  { %2801 = vmatpush3.msra.mxu0 %v174_v14  ;;  %2813 = vmatprep.mubr.msk.f32.mxu1 %vm3209_vm1, %v3208_v34  ;;  %v2621_v36 = vld [vmem:[%s3736_s5] ss:$0 sm:$0xff]  ;;  %s3211_s2 = smov 80   ;;  %s3212_s23 = smov 112   ;;  %vm266_vm2 = vcmask 130048   ;;  %v343_v44 = vshrl.u32 %v342_v43, 7 }
  0x47   :  { %2802 = vmatprep.subr.mxu0 %v173_v15  ;;  %v122_v46 = vld [vmem:[#allocation5] sm:$0x3]  ;;  %vm347_vm3 = vcmask 64512   ;;  %s3213_s24 = smov 64   ;;  %s3214_s26 = smov 48   ;;  %vm1212_vm4 = vcmask 523264  }
  0x48   :  { %2803 = vmatpush3.msra.mxu0 %v173_v15  ;;  %v344_v45 = vsub.s32 0, %v343_v44  ;;  %v687_v52 = vsub.s32 1, %v343_v44  ;;  %s3215_s20 = smov 16   ;;  %vm2513_vm5 = vcmask 1040384   ;;  %vm2600_vm6 = vcmask 254976  }
  0x49   :  { %132 = vadd.xlane.f32.xlu0 %v131_v3  ;;  %2804 = vmatprep.subr.mxu0 %v172_v16 }
  0x4a   :  { %2805 = vmatpush3.msra.mxu0 %v172_v16  ;;  %v3384_v47 = vrot.slane %v122_v46, %v344_v45  ;;  %v3388_v54 = vrot.slane %v122_v46, %v687_v52  ;;  %v951_v52 = vld [vmem:[%s3737_s6 + $0x10] sm:$0xff] }
  0x4b   :  { %2806 = vmatprep.subr.mxu0 %v171_v17 }
  0x4c   :  { %2807 = vmatpush3.msra.mxu0 %v171_v17 }
  0x4d   :  { %2831 = vmatprep.subr.mxu0 %v3208_v34 }
  0xce   :  { %v130_v4 = vpop.xlane.xlu0 %129 }
  0xcf   :  { %v135_v5 = vmul.f32 0.03125, %v130_v4 }
  0xd1   :  { %v137_v6 = vsub.f32 %v123_v0, %v135_v5 }
  0xd2   :  { %v133_v7 = vpop.xlane.xlu0 %132 }
  0xd3   :  { %v136_v8 = vmul.f32 0.03125, %v133_v7  ;;  %v139_v9 = vmul.f32 %v137_v6, %v137_v6 }
  0xd5   :  { %v138_v10 = vsub.f32 %v124_v1, %v136_v8  ;;  %v141_v11 = vsel %vm127_vm0, %v139_v9, 0.0 }
  0xd6   :  { %142 = vadd.xlane.f32.xlu1 %v141_v11 }
  0xd7   :  { %v140_v12 = vmul.f32 %v138_v10, %v138_v10 }
  0xd9   :  { %v144_v13 = vsel %vm127_vm0, %v140_v12, 0.0 }
  0xda   :  { %145 = vadd.xlane.f32.xlu1 %v144_v13 }
 0x15f   :  { %v143_v18 = vpop.xlane.xlu1 %142 }
 0x160   :  { %v147_v19 = vmul.f32 0.03125, %v143_v18 }
 0x162   :  { %v149_v20 = vadd.f32 1e-12, %v147_v19 }
 0x163   :  { %v146_v21 = vpop.xlane.xlu1 %145 }
 0x164   :  { %3011 = vrsqrt.f32 %v149_v20  ;;  %v148_v22 = vmul.f32 0.03125, %v146_v21 }
 0x166   :  { %v150_v23 = vadd.f32 1e-12, %v148_v22 }
 0x168   :  { %3013 = vrsqrt.f32 %v150_v23 }
 0x171   :  { %v3012_v24 = vpop.eup %3011 }
 0x172   :  { %v153_v26 = vmul.f32 %v3012_v24, %v137_v6 }
 0x174   :  { %v161_v28 = vmul.f32 %v2619_v25, %v153_v26 }
 0x175   :  { %v3014_v29 = vpop.eup %3013 }
 0x176   :  { %v154_v30 = vmul.f32 %v3014_v29, %v138_v10  ;;  %v3343_v31 = vadd.f32 %v2620_v27, %v161_v28 }
 0x178   :  { %v162_v32 = vmul.f32 %v2619_v25, %v154_v30  ;;  %2808 = vmatprep.mubr.msk.f32.mxu0 %vm127_vm0, %v3343_v31 }
 0x17a   :  { %v3347_v33 = vadd.f32 %v2620_v27, %v162_v32 }
 0x17c   :  { %2809 = vmatmul.mubr.msk.f32.vlgmr.msra.gmra.mxu0 %vm127_vm0, %v3347_v33 }
 0x17d   :  { %2833 = vmatprep.mubr.msk.f32.mxu0 %vm3209_vm1, %v3208_v34 }
 0x23c   :  { %v2810_v35 = vpop.f32.mrf.mxu0 }
 0x23d   :  { %v3366_v39 = vadd.f32 %v2810_v35, %v2621_v36 }
 0x23e   :  { %v254_v37 = vpop.f32.mrf.mxu0 }
 0x23f   :  { %v3360_v38 = vadd.f32 %v2621_v36, %v254_v37 }
 0x241   :  { %264 = vrot.lane.b32.xlu0 %v3360_v38, %s3210_s22 }
 0x245   :  { %437 = vrot.lane.b32.xlu0 %v3360_v38, %s3211_s2 }
 0x249   :  { %608 = vrot.lane.b32.xlu0 %v3366_v39, %s3210_s22 }
 0x24d   :  { %777 = vrot.lane.b32.xlu0 %v3366_v39, %s3212_s23 }
 0x2b3   :  { %v265_v40 = vpop.permute.xlu0 %264 }
 0x2b4   :  { %2812 = vmatpush3.xpose.msk.msra.mxu1 %vm266_vm2, %v265_v40 }
 0x2b5   :  { %2816 = vmatprep.subr.mxu1 %v3208_v34 }
 0x2b7   :  { %2814 = vmatmul.mubr.msk.f32.vlgmr.msra.gmra.mxu1 %vm266_vm2, %v3360_v38  ;;  %v438_v41 = vpop.permute.xlu0 %437 }
 0x2b8   :  { %2818 = vmatprep.mubr.msk.f32.mxu1 %vm3209_vm1, %v3208_v34 }
 0x2bb   :  { %v609_v42 = vpop.permute.xlu0 %608 }
 0x2bc   :  { %2832 = vmatpush3.xpose.msk.msra.mxu0 %vm266_vm2, %v609_v42 }
 0x2bd   :  { %2841 = vmatprep.subr.mxu0 %v3208_v34 }
 0x2bf   :  { %2834 = vmatmul.mubr.msk.f32.vlgmr.msra.gmra.mxu0 %vm266_vm2, %v3366_v39  ;;  %v778_v5 = vpop.permute.xlu0 %777 }
 0x2c0   :  { %2843 = vmatprep.mubr.msk.f32.mxu0 %vm3209_vm1, %v3208_v34 }
 0x377   :  { %v337_v48 = vpop.f32.mrf.mxu1 }
 0x378   :  { %v341_v49 = vmul.f32 0.25, %v337_v48 }
 0x379   :  { %v2815_v50 = vpop.f32.mrf.mxu1 }
 0x37a   :  { %v346_v51 = vadd.f32 %v3384_v47, %v341_v49 }
 0x37c   :  { %v348_v53 = vsel %vm347_vm3, %v346_v51, -inf }
 0x37d   :  { %349 = vmax.xlane.f32.xlu1 %v348_v53  ;;  %v950_v53 = vld [vmem:[%s3737_s6 + $0x8] sm:$0xff] }
 0x37f   :  { %v680_v55 = vpop.f32.mrf.mxu0 }
 0x380   :  { %v684_v56 = vmul.f32 0.25, %v680_v55  ;;  %v949_v55 = vld [vmem:[%s3737_s6] sm:$0xff] }
 0x381   :  { %v2835_v57 = vpop.f32.mrf.mxu0 }
 0x382   :  { %v689_v58 = vadd.f32 %v3388_v54, %v684_v56 }
 0x384   :  { %v690_v59 = vsel %vm347_vm3, %v689_v58, -inf }
 0x385   :  { %691 = vmax.xlane.f32.xlu0 %v690_v59 }
 0x38e   :  { %359 = vrot.lane.b32.xlu1 %v3360_v38, %s3213_s24 }
 0x406   :  { %v350_v60 = vpop.xlane.xlu1 %349 }
 0x407   :  { %v351_v61 = vsub.f32 %v346_v51, %v350_v60  ;;  %v952_v51 = vld [vmem:[%s3737_s6 + $0x18] sm:$0xff] }
 0x409   :  { %v352_v62 = vmul.f32 1.442695, %v351_v61 }
 0x40a   :  { %v360_v63 = vpop.permute.xlu1 %359 }
 0x40b   :  { %3015 = vpow2.f32 %v352_v62  ;;  %2817 = vmatpush3.msra.mxu1 %v360_v63 }
 0x40c   :  { %2821 = vmatprep.subr.mxu1 %v3208_v34 }
 0x40e   :  { %v692_v8 = vpop.xlane.xlu0 %691 }
 0x40f   :  { %v693_v9 = vsub.f32 %v689_v58, %v692_v8 }
 0x411   :  { %v694_v10 = vmul.f32 1.442695, %v693_v9 }
 0x418   :  { %v3016_v0 = vpop.eup %3015 }
 0x419   :  { %v354_v1 = vsel %vm347_vm3, %v3016_v0, 0.0 }
 0x41a   :  { %355 = vadd.xlane.f32.xlu1 %v354_v1 }
 0x42b   :  { %435 = vrot.lane.b32.xlu1 %v3360_v38, %s3212_s23 }
 0x42f   :  { %779 = vrot.lane.b32.xlu1 %v3366_v39, %s3211_s2 }
 0x4a3   :  { %v356_v2 = vpop.xlane.xlu1 %355 }
 0x4a4   :  { %3017 = vrcp.f32 %v356_v2  ;;  %v2636_v2 = vld [vmem:[%s3738_s7] ss:$0 sm:$0xff] }
 0x4a5   :  { %3019 = vpow2.f32 %v694_v10 }
 0x4a7   :  { %v436_v3 = vpop.permute.xlu1 %435 }
 0x4ab   :  { %v780_v4 = vpop.permute.xlu1 %779 }
 0x4ac   :  { %2842 = vmatpush3.xpose.msk.msra.mxu0 %vm266_vm2, %v780_v4 }
 0x4ad   :  { %2851 = vmatprep.subr.mxu0 %v952_v51 }
 0x4af   :  { %2844 = vmatmul.mubr.msk.f32.vlgmr.msra.gmra.mxu0 %vm266_vm2, %v778_v5 }
 0x4b0   :  { %2852 = vmatpush3.msra.mxu0 %v952_v51  ;;  %v2641_v51 = vld [vmem:[%s3742_s11] ss:$0 sm:$0xff] }
 0x4b1   :  { %v3018_v6 = vpop.eup %3017  ;;  %2853 = vmatprep.subr.mxu0 %v951_v52 }
 0x4b2   :  { %v358_v7 = vmul.f32 %v3018_v6, %v3016_v0  ;;  %v3020_v23 = vpop.eup %3019  ;;  %2854 = vmatpush3.msra.mxu0 %v951_v52 }
 0x4b3   :  { %v696_v24 = vsel %vm347_vm3, %v3020_v23, 0.0  ;;  %2855 = vmatprep.subr.mxu0 %v950_v53 }
 0x4b4   :  { %2819 = vmatmul.mubr.msk.f32.vlgmr.msra.gmra.mxu1 %vm347_vm3, %v358_v7  ;;  %2856 = vmatpush3.msra.mxu0 %v950_v53 }
 0x4b5   :  { %2822 = vmatpush3.xpose.msk.msra.mxu1 %vm266_vm2, %v438_v41  ;;  %2823 = vmatprep.mubr.msk.f32.mxu1 %vm3209_vm1, %v3208_v34 }
 0x4b6   :  { %2826 = vmatprep.subr.mxu1 %v3208_v34  ;;  %2857 = vmatprep.subr.mxu0 %v949_v55 }
 0x4b7   :  { %2858 = vmatpush3.msra.mxu0 %v949_v55 }
 0x4b8   :  { %2824 = vmatmul.mubr.msk.f32.vlgmr.msra.gmra.mxu1 %vm266_vm2, %v436_v3 }
 0x4b9   :  { %2828 = vmatprep.mubr.msk.f32.mxu1 %vm3209_vm1, %v3208_v34 }
 0x56f   :  { %v851_v11 = vpop.f32.mrf.mxu0 }
 0x570   :  { %v855_v12 = vmul.f32 0.25, %v851_v11 }
 0x571   :  { %v2845_v13 = vpop.f32.mrf.mxu0 }
 0x572   :  { %v856_v14 = vadd.f32 %v855_v12, %v3388_v54 }
 0x574   :  { %v3411_v15 = vpop.f32.mrf.mxu1  ;;  %v857_v16 = vsel %vm347_vm3, %v856_v14, -inf }
 0x575   :  { %858 = vmax.xlane.f32.xlu0 %v857_v16 }
 0x576   :  { %v2820_v17 = vpop.f32.mrf.mxu1 }
 0x578   :  { %v509_v18 = vpop.f32.mrf.mxu1 }
 0x579   :  { %v513_v19 = vmul.f32 0.25, %v509_v18 }
 0x57a   :  { %v2825_v20 = vpop.f32.mrf.mxu1 }
 0x57b   :  { %v514_v21 = vadd.f32 %v513_v19, %v3384_v47  ;;  %v1089_v20 = vld [vmem:[%s3741_s10 + $0x10] sm:$0xff] }
 0x57d   :  { %v515_v22 = vsel %vm347_vm3, %v514_v21, -inf }
 0x57e   :  { %516 = vmax.xlane.f32.xlu1 %v515_v22  ;;  %v1087_v22 = vld [vmem:[%s3741_s10] sm:$0xff] }
 0x582   :  { %697 = vadd.xlane.f32.xlu1 %v696_v24 }
 0x593   :  { %526 = vrot.lane.b32.xlu1 %v3360_v38, %s3214_s26 }
 0x597   :  { %868 = vrot.lane.b32.xlu1 %v3366_v39, %s3214_s26 }
 0x5fe   :  { %v859_v25 = vpop.xlane.xlu0 %858 }
 0x5ff   :  { %v860_v26 = vsub.f32 %v856_v14, %v859_v25 }
 0x601   :  { %v861_v27 = vmul.f32 1.442695, %v860_v26 }
 0x603   :  { %3021 = vpow2.f32 %v861_v27 }
 0x607   :  { %v517_v28 = vpop.xlane.xlu1 %516 }
 0x608   :  { %v518_v29 = vsub.f32 %v514_v21, %v517_v28  ;;  %v1088_v21 = vld [vmem:[%s3741_s10 + $0x8] sm:$0xff] }
 0x60a   :  { %v519_v30 = vmul.f32 1.442695, %v518_v29 }
 0x60b   :  { %v698_v32 = vpop.xlane.xlu1 %697 }
 0x60c   :  { %3023 = vpow2.f32 %v519_v30  ;;  %v2639_v30 = vld [vmem:[%s3739_s8] ss:$0 sm:$0xff] }
 0x60f   :  { %v527_v35 = vpop.permute.xlu1 %526 }
 0x610   :  { %v3022_v36 = vpop.eup %3021  ;;  %2827 = vmatpush3.msra.mxu1 %v527_v35  ;;  %v2640_v35 = vld [vmem:[%s3740_s9] ss:$0 sm:$0xff] }
 0x611   :  { %v863_v37 = vsel %vm347_vm3, %v3022_v36, 0.0  ;;  %2836 = vmatprep.subr.mxu1 %v3208_v34 }
 0x612   :  { %864 = vadd.xlane.f32.xlu0 %v863_v37 }
 0x619   :  { %v3024_v38 = vpop.eup %3023 }
 0x61a   :  { %v521_v40 = vsel %vm347_vm3, %v3024_v38, 0.0 }
 0x61b   :  { %522 = vadd.xlane.f32.xlu0 %v521_v40 }
 0x631   :  { %701 = vrot.lane.b32.xlu0 %v3366_v39, %s3213_s24  ;;  %v869_v39 = vpop.permute.xlu1 %868 }
 0x69b   :  { %v865_v41 = vpop.xlane.xlu0 %864 }
 0x6a4   :  { %v523_v42 = vpop.xlane.xlu0 %522 }
 0x6a5   :  { %3025 = vrcp.f32 %v523_v42 }
 0x6a6   :  { %3027 = vrcp.f32 %v698_v32 }
 0x6a7   :  { %3029 = vrcp.f32 %v865_v41 }
 0x6a8   :  { %v702_v46 = vpop.permute.xlu0 %701 }
 0x6b2   :  { %v3026_v43 = vpop.eup %3025 }
 0x6b3   :  { %v525_v44 = vmul.f32 %v3026_v43, %v3024_v38  ;;  %v3028_v45 = vpop.eup %3027  ;;  %v1204_v43 = vld [vmem:[%s3743_s12 + $0x38] sm:$0xff] }
 0x6b4   :  { %v700_v48 = vmul.f32 %v3028_v45, %v3020_v23  ;;  %v3030_v49 = vpop.eup %3029  ;;  %2873 = vmatprep.subr.mxu0 %v1204_v43  ;;  %v1202_v45 = vld [vmem:[%s3743_s12 + $0x28] sm:$0xff] }
 0x6b5   :  { %2829 = vmatmul.mubr.msk.f32.vlgmr.msra.gmra.mxu1 %vm347_vm3, %v525_v44  ;;  %v867_v50 = vmul.f32 %v3030_v49, %v3022_v36  ;;  %v1203_v44 = vld [vmem:[%s3743_s12 + $0x30] sm:$0xff] }
 0x6b6   :  { %2837 = vmatpush3.msra.mxu1 %v702_v46  ;;  %2838 = vmatprep.mubr.msk.f32.mxu1 %vm3209_vm1, %v3208_v34  ;;  %v1201_v46 = vld [vmem:[%s3743_s12 + $0x20] sm:$0xff]  ;;  %v1199_v49 = vld [vmem:[%s3743_s12 + $0x10] sm:$0xff] }
 0x6b7   :  { %2846 = vmatprep.subr.mxu1 %v3208_v34 }
 0x6b9   :  { %2839 = vmatmul.mubr.msk.f32.vlgmr.msra.gmra.mxu1 %vm347_vm3, %v700_v48  ;;  %v1200_v48 = vld [vmem:[%s3743_s12 + $0x18] sm:$0xff] }
 0x6ba   :  { %2847 = vmatpush3.msra.mxu1 %v869_v39  ;;  %2848 = vmatprep.mubr.msk.f32.mxu1 %vm3209_vm1, %v3208_v34  ;;  %v1198_v39 = vld [vmem:[%s3743_s12 + $0x8] sm:$0xff] }
 0x6bd   :  { %2849 = vmatmul.mubr.msk.f32.vlgmr.msra.gmra.mxu1 %vm347_vm3, %v867_v50  ;;  %v1197_v50 = vld [vmem:[%s3743_s12] sm:$0xff] }
 0x775   :  { %v598_v56 = vpop.f32.mrf.mxu1 }
 0x776   :  { %603 = vrot.lane.b32.xlu1 %v598_v56, %s3215_s20 }
 0x777   :  { %v2830_v57 = vpop.f32.mrf.mxu1 }
 0x779   :  { %v773_v58 = vpop.f32.mrf.mxu1 }
 0x77b   :  { %v2840_v59 = vpop.f32.mrf.mxu1 }
 0x77d   :  { %v940_v60 = vpop.f32.mrf.mxu1 }
 0x77e   :  { %945 = vrot.lane.b32.xlu1 %v940_v60, %s3215_s20 }
 0x77f   :  { %v2850_v61 = vpop.f32.mrf.mxu1 }
 0x7e8   :  { %v604_v62 = vpop.permute.xlu1 %603 }
 0x7e9   :  { %v606_v63 = vsel %vm266_vm2, %v3411_v15, %v604_v62 }
 0x7ea   :  { %2859 = vmatprep.mubr.msk.f32.mxu0 %vm127_vm0, %v606_v63 }
 0x7f0   :  { %v946_v0 = vpop.permute.xlu1 %945 }
 0x7f1   :  { %v948_v1 = vsel %vm266_vm2, %v773_v58, %v946_v0 }
 0x7f2   :  { %2860 = vmatmul.mubr.msk.f32.vlgmr.msra.gmra.mxu0 %vm127_vm0, %v948_v1 }
 0x7f3   :  { %2874 = vmatpush3.msra.mxu0 %v1204_v43  ;;  %v2647_v43 = vld [vmem:[%s3745_s14] ss:$0 sm:$0xff] }
 0x7f4   :  { %2875 = vmatprep.subr.mxu0 %v1203_v44 }
 0x7f5   :  { %2876 = vmatpush3.msra.mxu0 %v1203_v44 }
 0x7f6   :  { %2877 = vmatprep.subr.mxu0 %v1202_v45 }
 0x7f7   :  { %2878 = vmatpush3.msra.mxu0 %v1202_v45 }
 0x7f8   :  { %2879 = vmatprep.subr.mxu0 %v1201_v46 }
 0x7f9   :  { %2880 = vmatpush3.msra.mxu0 %v1201_v46 }
 0x7fa   :  { %2881 = vmatprep.subr.mxu0 %v1200_v48 }
 0x7fb   :  { %2882 = vmatpush3.msra.mxu0 %v1200_v48 }
 0x7fc   :  { %2883 = vmatprep.subr.mxu0 %v1199_v49 }
 0x7fd   :  { %2884 = vmatpush3.msra.mxu0 %v1199_v49  ;;  %v2648_v49 = vld [vmem:[%s3746_s15] ss:$0 sm:$0xff] }
 0x7fe   :  { %2885 = vmatprep.subr.mxu0 %v1198_v39 }
 0x7ff   :  { %2886 = vmatpush3.msra.mxu0 %v1198_v39 }
 0x800   :  { %2887 = vmatprep.subr.mxu0 %v1197_v50 }
 0x801   :  { %2888 = vmatpush3.msra.mxu0 %v1197_v50 }
 0x802   :  { %2913 = vmatprep.subr.mxu0 %v3208_v34 }
 0x8b2   :  { %v2861_v3 = vpop.f32.mrf.mxu0 }
 0x8b3   :  { %v1038_v4 = vadd.f32 %v2861_v3, %v2636_v2 }
 0x8b4   :  { %v1032_v5 = vpop.f32.mrf.mxu0 }
 0x8b5   :  { %v1033_v6 = vadd.f32 %v2636_v2, %v1032_v5  ;;  %v1042_v7 = vadd.f32 %v1038_v4, %v3347_v33 }
 0x8b7   :  { %v1048_v8 = vsel %vm127_vm0, %v1042_v7, 0.0  ;;  %v1041_v9 = vadd.f32 %v1033_v6, %v3343_v31  ;;  %v1090_v31 = vld [vmem:[%s3741_s10 + $0x18] sm:$0xff] }
 0x8b8   :  { %1049 = vadd.xlane.f32.xlu1 %v1048_v8  ;;  %2862 = vmatprep.subr.mxu1 %v1090_v31 }
 0x8b9   :  { %v1045_v10 = vsel %vm127_vm0, %v1041_v9, 0.0  ;;  %2863 = vmatpush3.msra.mxu1 %v1090_v31 }
 0x8ba   :  { %1046 = vadd.xlane.f32.xlu0 %v1045_v10  ;;  %2864 = vmatprep.subr.mxu1 %v1089_v20 }
 0x8bb   :  { %2865 = vmatpush3.msra.mxu1 %v1089_v20 }
 0x8bc   :  { %2866 = vmatprep.subr.mxu1 %v1088_v21 }
 0x8bd   :  { %2867 = vmatpush3.msra.mxu1 %v1088_v21 }
 0x8be   :  { %2868 = vmatprep.subr.mxu1 %v1087_v22 }
 0x8bf   :  { %2869 = vmatpush3.msra.mxu1 %v1087_v22 }
 0x941   :  { %v1050_v11 = vpop.xlane.xlu1 %1049 }
 0x942   :  { %v1052_v12 = vmul.f32 0.03125, %v1050_v11  ;;  %v2644_v11 = vld [vmem:[%s3744_s13] ss:$0 sm:$0xff] }
 0x943   :  { %v1047_v13 = vpop.xlane.xlu0 %1046 }
 0x944   :  { %v1051_v14 = vmul.f32 0.03125, %v1047_v13  ;;  %v1054_v15 = vsub.f32 %v1042_v7, %v1052_v12 }
 0x946   :  { %v1053_v16 = vsub.f32 %v1041_v9, %v1051_v14  ;;  %v1056_v19 = vmul.f32 %v1054_v15, %v1054_v15 }
 0x948   :  { %v1055_v17 = vmul.f32 %v1053_v16, %v1053_v16  ;;  %v1060_v33 = vsel %vm127_vm0, %v1056_v19, 0.0 }
 0x94a   :  { %v1057_v18 = vsel %vm127_vm0, %v1055_v17, 0.0 }
 0x94b   :  { %1058 = vadd.xlane.f32.xlu0 %v1057_v18 }
 0x94f   :  { %1061 = vadd.xlane.f32.xlu0 %v1060_v33 }
 0x9d4   :  { %v1059_v23 = vpop.xlane.xlu0 %1058 }
 0x9d5   :  { %v1063_v24 = vmul.f32 0.03125, %v1059_v23 }
 0x9d7   :  { %v1065_v25 = vadd.f32 1e-12, %v1063_v24 }
 0x9d8   :  { %v1062_v26 = vpop.xlane.xlu0 %1061 }
 0x9d9   :  { %3031 = vrsqrt.f32 %v1065_v25  ;;  %v1064_v27 = vmul.f32 0.03125, %v1062_v26 }
 0x9db   :  { %v1066_v28 = vadd.f32 1e-12, %v1064_v27 }
 0x9dd   :  { %3033 = vrsqrt.f32 %v1066_v28  ;;  %v2652_v28 = vld [vmem:[%s3735_s4 + $0x38] sm:$0xff] }
 0x9de   :  { %2892 = vmatprep.subr.mxu1 %v2652_v28 }
 0x9e6   :  { %v3032_v29 = vpop.eup %3031 }
 0x9e7   :  { %v1069_v32 = vmul.f32 %v3032_v29, %v1053_v16  ;;  %v2651_v29 = vld [vmem:[%s3735_s4 + $0x30] sm:$0xff] }
 0x9e9   :  { %v1077_v36 = vmul.f32 %v2639_v30, %v1069_v32  ;;  %v2649_v32 = vld [vmem:[%s3735_s4 + $0x20] sm:$0xff] }
 0x9ea   :  { %v3034_v37 = vpop.eup %3033 }
 0x9eb   :  { %v1070_v38 = vmul.f32 %v3034_v37, %v1054_v15  ;;  %v3480_v40 = vadd.f32 %v2640_v35, %v1077_v36 }
 0x9ed   :  { %v1078_v41 = vmul.f32 %v2639_v30, %v1070_v38  ;;  %2870 = vmatprep.mubr.msk.f32.mxu1 %vm127_vm0, %v3480_v40  ;;  %v2650_v30 = vld [vmem:[%s3735_s4 + $0x28] sm:$0xff] }
 0x9ef   :  { %v1086_v42 = vadd.f32 %v2640_v35, %v1078_v41 }
 0x9f1   :  { %2871 = vmatmul.mubr.msk.f32.vlgmr.msra.gmra.mxu1 %vm127_vm0, %v1086_v42 }
 0x9f2   :  { %2893 = vmatpush3.msra.mxu1 %v2652_v28 }
 0x9f3   :  { %2894 = vmatprep.subr.mxu1 %v2651_v29 }
 0x9f4   :  { %2895 = vmatpush3.msra.mxu1 %v2651_v29 }
 0x9f5   :  { %2896 = vmatprep.subr.mxu1 %v2650_v30 }
 0x9f6   :  { %2897 = vmatpush3.msra.mxu1 %v2650_v30 }
 0x9f7   :  { %2898 = vmatprep.subr.mxu1 %v2649_v32 }
 0x9f8   :  { %2899 = vmatpush3.msra.mxu1 %v2649_v32 }
 0x9f9   :  { %2903 = vmatprep.subr.mxu1 %v3208_v34 }
 0xab1   :  { %v2872_v52 = vpop.f32.mrf.mxu1 }
 0xab2   :  { %v1176_v53 = vadd.f32 %v2872_v52, %v2641_v51 }
 0xab3   :  { %v1170_v55 = vpop.f32.mrf.mxu1 }
 0xab4   :  { %v1182_v56 = vmul.f32 0.044715, %v1176_v53  ;;  %v1171_v57 = vadd.f32 %v2641_v51, %v1170_v55  ;;  %v1180_v8 = vmul.f32 0.5, %v1176_v53 }
 0xab6   :  { %v1184_v58 = vmul.f32 %v1182_v56, %v1176_v53  ;;  %v1181_v59 = vmul.f32 0.044715, %v1171_v57  ;;  %v1179_v6 = vmul.f32 0.5, %v1171_v57 }
 0xab8   :  { %v1186_v60 = vmul.f32 %v1184_v58, %v1176_v53  ;;  %v1183_v61 = vmul.f32 %v1181_v59, %v1171_v57 }
 0xaba   :  { %v1188_v62 = vadd.f32 %v1186_v60, %v1176_v53  ;;  %v1185_v63 = vmul.f32 %v1183_v61, %v1171_v57  ;;  %v2654_v53 = vld [vmem:[%s3736_s5 + $0x1] ss:$0 sm:$0xff] }
 0xabc   :  { %v1190_v0 = vmul.f32 0.7978846, %v1188_v62  ;;  %v1187_v1 = vadd.f32 %v1185_v63, %v1171_v57 }
 0xabe   :  { %3035 = vtanh.f32 %v1190_v0  ;;  %v1189_v2 = vmul.f32 0.7978846, %v1187_v1 }
 0xac0   :  { %3037 = vtanh.f32 %v1189_v2 }
 0xacb   :  { %v3036_v3 = vpop.eup %3035 }
 0xacc   :  { %v1194_v5 = vadd.f32 1.0, %v3036_v3 }
 0xacd   :  { %v3038_v4 = vpop.eup %3037 }
 0xace   :  { %v1193_v7 = vadd.f32 1.0, %v3038_v4  ;;  %v1196_v10 = vmul.f32 %v1194_v5, %v1180_v8 }
 0xad0   :  { %v1195_v9 = vmul.f32 %v1193_v7, %v1179_v6 }
 0xad2   :  { %2889 = vmatprep.mubr.msk.f32.mxu0 %vm1212_vm4, %v1195_v9 }
 0xad3   :  { %2890 = vmatmul.mubr.msk.f32.vlgmr.msra.gmra.mxu0 %vm1212_vm4, %v1196_v10 }
 0xad4   :  { %2915 = vmatprep.mubr.msk.f32.mxu0 %vm3209_vm1, %v3208_v34 }
 0xb93   :  { %v2891_v12 = vpop.f32.mrf.mxu0 }
 0xb94   :  { %v1291_v13 = vadd.f32 %v2891_v12, %v2644_v11 }
 0xb95   :  { %v1285_v14 = vpop.f32.mrf.mxu0 }
 0xb96   :  { %v1286_v15 = vadd.f32 %v2644_v11, %v1285_v14  ;;  %v1295_v16 = vadd.f32 %v1291_v13, %v1086_v42 }
 0xb98   :  { %v1301_v17 = vsel %vm127_vm0, %v1295_v16, 0.0  ;;  %v1294_v18 = vadd.f32 %v1286_v15, %v3480_v40 }
 0xb99   :  { %1302 = vadd.xlane.f32.xlu1 %v1301_v17 }
 0xb9a   :  { %v1298_v19 = vsel %vm127_vm0, %v1294_v18, 0.0 }
 0xb9b   :  { %1299 = vadd.xlane.f32.xlu0 %v1298_v19 }
 0xc22   :  { %v1303_v33 = vpop.xlane.xlu1 %1302 }
 0xc23   :  { %v1305_v31 = vmul.f32 0.03125, %v1303_v33 }
 0xc24   :  { %v1300_v20 = vpop.xlane.xlu0 %1299 }
 0xc25   :  { %v1307_v21 = vsub.f32 %v1295_v16, %v1305_v31  ;;  %v1304_v22 = vmul.f32 0.03125, %v1300_v20 }
 0xc27   :  { %v1306_v23 = vsub.f32 %v1294_v18, %v1304_v22  ;;  %v1309_v24 = vmul.f32 %v1307_v21, %v1307_v21 }
 0xc29   :  { %v1313_v25 = vsel %vm127_vm0, %v1309_v24, 0.0  ;;  %v1308_v26 = vmul.f32 %v1306_v23, %v1306_v23 }
 0xc2a   :  { %1314 = vadd.xlane.f32.xlu1 %v1313_v25 }
 0xc2b   :  { %v1310_v27 = vsel %vm127_vm0, %v1308_v26, 0.0 }
 0xc2c   :  { %1311 = vadd.xlane.f32.xlu0 %v1310_v27 }
 0xcb3   :  { %v1315_v35 = vpop.xlane.xlu1 %1314 }
 0xcb4   :  { %v1317_v36 = vmul.f32 0.03125, %v1315_v35 }
 0xcb5   :  { %v1312_v37 = vpop.xlane.xlu0 %1311 }
 0xcb6   :  { %v1319_v38 = vadd.f32 1e-12, %v1317_v36  ;;  %v1316_v40 = vmul.f32 0.03125, %v1312_v37 }
 0xcb8   :  { %3039 = vrsqrt.f32 %v1319_v38  ;;  %v1318_v41 = vadd.f32 1e-12, %v1316_v40 }
 0xcba   :  { %3041 = vrsqrt.f32 %v1318_v41 }
 0xcc5   :  { %v3040_v42 = vpop.eup %3039 }
 0xcc6   :  { %v1323_v44 = vmul.f32 %v3040_v42, %v1307_v21 }
 0xcc7   :  { %v3042_v45 = vpop.eup %3041 }
 0xcc8   :  { %v1322_v46 = vmul.f32 %v3042_v45, %v1306_v23  ;;  %v1331_v48 = vmul.f32 %v2647_v43, %v1323_v44 }
 0xcca   :  { %v1330_v39 = vmul.f32 %v2647_v43, %v1322_v46  ;;  %v3546_v51 = vadd.f32 %v2648_v49, %v1331_v48 }
 0xccc   :  { %v3544_v50 = vadd.f32 %v2648_v49, %v1330_v39 }
 0xcce   :  { %2900 = vmatprep.mubr.msk.f32.mxu1 %vm127_vm0, %v3544_v50 }
 0xccf   :  { %2901 = vmatmul.mubr.msk.f32.vlgmr.msra.gmra.mxu1 %vm127_vm0, %v3546_v51 }
 0xcd0   :  { %2905 = vmatprep.mubr.msk.f32.mxu1 %vm3209_vm1, %v3208_v34 }
 0xd8f   :  { %v2902_v52 = vpop.f32.mrf.mxu1 }
 0xd90   :  { %v3563_v57 = vadd.f32 %v2902_v52, %v2654_v53 }
 0xd91   :  { %v1425_v55 = vpop.f32.mrf.mxu1 }
 0xd92   :  { %v3557_v56 = vadd.f32 %v2654_v53, %v1425_v55 }
 0xd94   :  { %1602 = vrot.lane.b32.xlu1 %v3557_v56, %s3211_s2  ;;  %1435 = vrot.lane.b32.xlu0 %v3557_v56, %s3210_s22 }
 0xd98   :  { %1600 = vrot.lane.b32.xlu1 %v3557_v56, %s3212_s23  ;;  %1940 = vrot.lane.b32.xlu0 %v3563_v57, %s3211_s2 }
 0xd9c   :  { %1773 = vrot.lane.b32.xlu1 %v3563_v57, %s3210_s22 }
 0xda0   :  { %1938 = vrot.lane.b32.xlu1 %v3563_v57, %s3212_s23 }
 0xe06   :  { %v1603_v58 = vpop.permute.xlu1 %1602  ;;  %v1436_v59 = vpop.permute.xlu0 %1435 }
 0xe07   :  { %2904 = vmatpush3.xpose.msk.msra.mxu1 %vm266_vm2, %v1436_v59  ;;  %2914 = vmatpush3.xpose.msk.msra.mxu0 %vm266_vm2, %v1603_v58  ;;  %v2672_v59 = vld [vmem:[%s3737_s6 + $0x38] sm:$0xff] }
 0xe08   :  { %2923 = vmatprep.subr.mxu0 %v3208_v34  ;;  %2908 = vmatprep.subr.mxu1 %v3208_v34 }
 0xe0a   :  { %v1601_v60 = vpop.permute.xlu1 %1600  ;;  %2906 = vmatmul.mubr.msk.f32.vlgmr.msra.gmra.mxu1 %vm266_vm2, %v3557_v56  ;;  %v1941_v62 = vpop.permute.xlu0 %1940 }
 0xe0b   :  { %2916 = vmatmul.mubr.msk.f32.vlgmr.msra.gmra.mxu0 %vm266_vm2, %v1601_v60  ;;  %2910 = vmatprep.mubr.msk.f32.mxu1 %vm3209_vm1, %v3208_v34  ;;  %v2671_v60 = vld [vmem:[%s3737_s6 + $0x30] sm:$0xff] }
 0xe0c   :  { %2925 = vmatprep.mubr.msk.f32.mxu0 %vm3209_vm1, %v3208_v34 }
 0xe0e   :  { %v1774_v61 = vpop.permute.xlu1 %1773 }
 0xe0f   :  { %2924 = vmatpush3.xpose.msk.msra.mxu0 %vm266_vm2, %v1774_v61  ;;  %v2670_v61 = vld [vmem:[%s3737_s6 + $0x28] sm:$0xff] }
 0xe10   :  { %2933 = vmatprep.subr.mxu0 %v3208_v34 }
 0xe12   :  { %2926 = vmatmul.mubr.msk.f32.vlgmr.msra.gmra.mxu0 %vm266_vm2, %v3563_v57  ;;  %v1939_v63 = vpop.permute.xlu1 %1938 }
 0xe13   :  { %2934 = vmatpush3.xpose.msk.msra.mxu0 %vm266_vm2, %v1941_v62  ;;  %2935 = vmatprep.mubr.msk.f32.mxu0 %vm3209_vm1, %v3208_v34  ;;  %v2669_v62 = vld [vmem:[%s3737_s6 + $0x20] sm:$0xff] }
 0xe14   :  { %2943 = vmatprep.subr.mxu0 %v2672_v59 }
 0xe16   :  { %2936 = vmatmul.mubr.msk.f32.vlgmr.msra.gmra.mxu0 %vm266_vm2, %v1939_v63 }
 0xe17   :  { %2944 = vmatpush3.msra.mxu0 %v2672_v59  ;;  %v2686_v59 = vld [vmem:[%s3742_s11 + $0x1] ss:$0 sm:$0xff] }
 0xe18   :  { %2945 = vmatprep.subr.mxu0 %v2671_v60 }
 0xe19   :  { %2946 = vmatpush3.msra.mxu0 %v2671_v60 }
 0xe1a   :  { %2947 = vmatprep.subr.mxu0 %v2670_v61 }
 0xe1b   :  { %2948 = vmatpush3.msra.mxu0 %v2670_v61 }
 0xe1c   :  { %2949 = vmatprep.subr.mxu0 %v2669_v62 }
 0xe1d   :  { %2950 = vmatpush3.msra.mxu0 %v2669_v62 }
 0xeca   :  { %v1507_v0 = vpop.f32.mrf.mxu1 }
 0xecb   :  { %v1511_v1 = vmul.f32 0.25, %v1507_v0  ;;  %v1674_v2 = vpop.f32.mrf.mxu0 }
 0xecc   :  { %v1678_v3 = vmul.f32 0.25, %v1674_v2  ;;  %v2907_v4 = vpop.f32.mrf.mxu1 }
 0xecd   :  { %v2917_v5 = vpop.f32.mrf.mxu0  ;;  %v1512_v6 = vadd.f32 %v1511_v1, %v3384_v47 }
 0xece   :  { %v1679_v7 = vadd.f32 %v1678_v3, %v3384_v47 }
 0xecf   :  { %v1513_v8 = vsel %vm347_vm3, %v1512_v6, -inf }
 0xed0   :  { %1514 = vmax.xlane.f32.xlu0 %v1513_v8  ;;  %v1680_v9 = vsel %vm347_vm3, %v1679_v7, -inf }
 0xed1   :  { %1681 = vmax.xlane.f32.xlu1 %v1680_v9 }
 0xed2   :  { %v1845_v10 = vpop.f32.mrf.mxu0 }
 0xed3   :  { %v1849_v11 = vmul.f32 0.25, %v1845_v10 }
 0xed4   :  { %v2927_v12 = vpop.f32.mrf.mxu0 }
 0xed5   :  { %v1850_v13 = vadd.f32 %v1849_v11, %v3388_v54  ;;  %v2674_v11 = vld [vmem:[%s3738_s7 + $0x1] ss:$0 sm:$0xff] }
 0xed6   :  { %v2012_v14 = vpop.f32.mrf.mxu0 }
 0xed7   :  { %v2016_v15 = vmul.f32 0.25, %v2012_v14  ;;  %v1851_v16 = vsel %vm347_vm3, %v1850_v13, -inf }
 0xed8   :  { %1852 = vmax.xlane.f32.xlu0 %v1851_v16  ;;  %v2937_v17 = vpop.f32.mrf.mxu0 }
 0xed9   :  { %v2017_v18 = vadd.f32 %v2016_v15, %v3388_v54 }
 0xedb   :  { %v2018_v47 = vsel %vm347_vm3, %v2017_v18, -inf }
 0xedc   :  { %2019 = vmax.xlane.f32.xlu0 %v2018_v47 }
 0xf59   :  { %v1515_v19 = vpop.xlane.xlu0 %1514 }
 0xf5a   :  { %v1516_v33 = vsub.f32 %v1512_v6, %v1515_v19  ;;  %v1682_v31 = vpop.xlane.xlu1 %1681 }
 0xf5b   :  { %v1683_v20 = vsub.f32 %v1679_v7, %v1682_v31 }
 0xf5c   :  { %v1517_v21 = vmul.f32 1.442695, %v1516_v33 }
 0xf5d   :  { %v1684_v22 = vmul.f32 1.442695, %v1683_v20 }
 0xf5e   :  { %3043 = vpow2.f32 %v1517_v21 }
 0xf5f   :  { %3045 = vpow2.f32 %v1684_v22 }
 0xf61   :  { %v1853_v23 = vpop.xlane.xlu0 %1852 }
 0xf62   :  { %v1854_v24 = vsub.f32 %v1850_v13, %v1853_v23 }
 0xf64   :  { %v1855_v25 = vmul.f32 1.442695, %v1854_v24 }
 0xf65   :  { %v2020_v32 = vpop.xlane.xlu0 %2019 }
 0xf66   :  { %3047 = vpow2.f32 %v1855_v25  ;;  %v2021_v35 = vsub.f32 %v2017_v18, %v2020_v32 }
 0xf68   :  { %v2022_v36 = vmul.f32 1.442695, %v2021_v35 }
 0xf6a   :  { %3049 = vpow2.f32 %v2022_v36 }
 0xf6b   :  { %v3044_v26 = vpop.eup %3043 }
 0xf6c   :  { %v3046_v27 = vpop.eup %3045  ;;  %v1519_v28 = vsel %vm347_vm3, %v3044_v26, 0.0 }
 0xf6d   :  { %1520 = vadd.xlane.f32.xlu0 %v1519_v28  ;;  %v1686_v54 = vsel %vm347_vm3, %v3046_v27, 0.0  ;;  %v2681_v28 = vld [vmem:[%s3741_s10 + $0x20] sm:$0xff] }
 0xf6e   :  { %1687 = vadd.xlane.f32.xlu1 %v1686_v54 }
 0xf73   :  { %v3048_v29 = vpop.eup %3047 }
 0xf74   :  { %v1857_v30 = vsel %vm347_vm3, %v3048_v29, 0.0 }
 0xf75   :  { %1858 = vadd.xlane.f32.xlu0 %v1857_v30 }
 0xf77   :  { %v3050_v37 = vpop.eup %3049 }
 0xf78   :  { %v2024_v38 = vsel %vm347_vm3, %v3050_v37, 0.0 }
 0xf7f   :  { %1691 = vrot.lane.b32.xlu1 %v3557_v56, %s3214_s26 }
 0xf83   :  { %1862 = vrot.lane.b32.xlu1 %v3563_v57, %s3213_s24 }
 0xf8b   :  { %1524 = vrot.lane.b32.xlu0 %v3557_v56, %s3213_s24 }
 0xfa7   :  { %2025 = vadd.xlane.f32.xlu1 %v2024_v38  ;;  %v2679_v38 = vld [vmem:[%s3739_s8 + $0x1] ss:$0 sm:$0xff] }
 0xfb8   :  { %2029 = vrot.lane.b32.xlu1 %v3563_v57, %s3214_s26 }
 0xff6   :  { %v1521_v40 = vpop.xlane.xlu0 %1520 }
 0xff7   :  { %3051 = vrcp.f32 %v1521_v40  ;;  %v1688_v41 = vpop.xlane.xlu1 %1687 }
 0xff8   :  { %3053 = vrcp.f32 %v1688_v41  ;;  %v2680_v41 = vld [vmem:[%s3740_s9 + $0x1] ss:$0 sm:$0xff] }
 0xffb   :  { %v1692_v45 = vpop.permute.xlu1 %1691 }
 0xffe   :  { %v1859_v42 = vpop.xlane.xlu0 %1858 }
 0xfff   :  { %3055 = vrcp.f32 %v1859_v42  ;;  %v1863_v39 = vpop.permute.xlu1 %1862 }
0x1002   :  { %v1525_v43 = vpop.permute.xlu0 %1524 }
0x1003   :  { %2909 = vmatpush3.msra.mxu1 %v1525_v43 }
0x1004   :  { %v3052_v44 = vpop.eup %3051  ;;  %2918 = vmatprep.subr.mxu1 %v3208_v34 }
0x1005   :  { %v1523_v46 = vmul.f32 %v3052_v44, %v3044_v26  ;;  %v3054_v48 = vpop.eup %3053  ;;  %v2683_v26 = vld [vmem:[%s3741_s10 + $0x30] sm:$0xff] }
0x1006   :  { %v1690_v49 = vmul.f32 %v3054_v48, %v3046_v27  ;;  %v2682_v27 = vld [vmem:[%s3741_s10 + $0x28] sm:$0xff] }
0x1007   :  { %2911 = vmatmul.mubr.msk.f32.vlgmr.msra.gmra.mxu1 %vm347_vm3, %v1523_v46 }
0x1008   :  { %2919 = vmatpush3.msra.mxu1 %v1692_v45  ;;  %2920 = vmatprep.mubr.msk.f32.mxu1 %vm3209_vm1, %v3208_v34 }
0x1009   :  { %2928 = vmatprep.subr.mxu1 %v3208_v34 }
0x100b   :  { %2921 = vmatmul.mubr.msk.f32.vlgmr.msra.gmra.mxu1 %vm347_vm3, %v1690_v49  ;;  %v2696_v49 = vld [vmem:[%s3743_s12 + $0x78] sm:$0xff] }
0x100c   :  { %v3056_v52 = vpop.eup %3055  ;;  %2929 = vmatpush3.msra.mxu1 %v1863_v39  ;;  %2930 = vmatprep.mubr.msk.f32.mxu1 %vm3209_vm1, %v3208_v34  ;;  %v2695_v39 = vld [vmem:[%s3743_s12 + $0x70] sm:$0xff] }
0x100d   :  { %v1861_v53 = vmul.f32 %v3056_v52, %v3048_v29  ;;  %2938 = vmatprep.subr.mxu1 %v3208_v34  ;;  %2965 = vmatprep.subr.mxu0 %v2696_v49  ;;  %v2694_v52 = vld [vmem:[%s3743_s12 + $0x68] sm:$0xff] }
0x100f   :  { %2931 = vmatmul.mubr.msk.f32.vlgmr.msra.gmra.mxu1 %vm347_vm3, %v1861_v53  ;;  %v2693_v53 = vld [vmem:[%s3743_s12 + $0x60] sm:$0xff] }
0x1010   :  { %2940 = vmatprep.mubr.msk.f32.mxu1 %vm3209_vm1, %v3208_v34 }
0x1030   :  { %v2026_v55 = vpop.xlane.xlu1 %2025 }
0x1031   :  { %3057 = vrcp.f32 %v2026_v55  ;;  %v2692_v55 = vld [vmem:[%s3743_s12 + $0x58] sm:$0xff] }
0x1034   :  { %v2030_v56 = vpop.permute.xlu1 %2029 }
0x1035   :  { %2939 = vmatpush3.msra.mxu1 %v2030_v56  ;;  %v2691_v56 = vld [vmem:[%s3743_s12 + $0x50] sm:$0xff] }
0x103e   :  { %v3058_v57 = vpop.eup %3057 }
0x103f   :  { %v2028_v58 = vmul.f32 %v3058_v57, %v3050_v37  ;;  %v2690_v57 = vld [vmem:[%s3743_s12 + $0x48] sm:$0xff] }
0x1041   :  { %2941 = vmatmul.mubr.msk.f32.vlgmr.msra.gmra.mxu1 %vm347_vm3, %v2028_v58  ;;  %v2689_v58 = vld [vmem:[%s3743_s12 + $0x40] sm:$0xff] }
0x10c7   :  { %v1596_v63 = vpop.f32.mrf.mxu1 }
0x10c9   :  { %v2912_v0 = vpop.f32.mrf.mxu1 }
0x10cb   :  { %v1763_v1 = vpop.f32.mrf.mxu1 }
0x10cc   :  { %1768 = vrot.lane.b32.xlu0 %v1763_v1, %s3215_s20 }
0x10cd   :  { %v2922_v2 = vpop.f32.mrf.mxu1 }
0x10cf   :  { %v1934_v3 = vpop.f32.mrf.mxu1 }
0x10d1   :  { %v2932_v4 = vpop.f32.mrf.mxu1 }
0x1101   :  { %v2101_v5 = vpop.f32.mrf.mxu1 }
0x1102   :  { %2106 = vrot.lane.b32.xlu1 %v2101_v5, %s3215_s20 }
0x1103   :  { %v2942_v6 = vpop.f32.mrf.mxu1 }
0x113e   :  { %v1769_v7 = vpop.permute.xlu0 %1768 }
0x113f   :  { %v1771_v8 = vsel %vm266_vm2, %v1596_v63, %v1769_v7 }
0x1140   :  { %2951 = vmatprep.mubr.msk.f32.mxu0 %vm127_vm0, %v1771_v8 }
0x1174   :  { %v2107_v9 = vpop.permute.xlu1 %2106 }
0x1175   :  { %v2109_v10 = vsel %vm266_vm2, %v1934_v3, %v2107_v9 }
0x1176   :  { %2952 = vmatmul.mubr.msk.f32.vlgmr.msra.gmra.mxu0 %vm127_vm0, %v2109_v10 }
0x1177   :  { %2966 = vmatpush3.msra.mxu0 %v2696_v49 }
0x1178   :  { %2967 = vmatprep.subr.mxu0 %v2695_v39 }
0x1179   :  { %2968 = vmatpush3.msra.mxu0 %v2695_v39 }
0x117a   :  { %2969 = vmatprep.subr.mxu0 %v2694_v52 }
0x117b   :  { %2970 = vmatpush3.msra.mxu0 %v2694_v52 }
0x117c   :  { %2971 = vmatprep.subr.mxu0 %v2693_v53 }
0x117d   :  { %2972 = vmatpush3.msra.mxu0 %v2693_v53 }
0x117e   :  { %2973 = vmatprep.subr.mxu0 %v2692_v55 }
0x117f   :  { %2974 = vmatpush3.msra.mxu0 %v2692_v55 }
0x1180   :  { %2975 = vmatprep.subr.mxu0 %v2691_v56 }
0x1181   :  { %2976 = vmatpush3.msra.mxu0 %v2691_v56 }
0x1182   :  { %2977 = vmatprep.subr.mxu0 %v2690_v57 }
0x1183   :  { %2978 = vmatpush3.msra.mxu0 %v2690_v57 }
0x1184   :  { %2979 = vmatprep.subr.mxu0 %v2689_v58 }
0x1185   :  { %2980 = vmatpush3.msra.mxu0 %v2689_v58 }
0x1236   :  { %v2953_v12 = vpop.f32.mrf.mxu0 }
0x1237   :  { %v2201_v13 = vadd.f32 %v2953_v12, %v2674_v11 }
0x1238   :  { %v2195_v14 = vpop.f32.mrf.mxu0 }
0x1239   :  { %v2196_v15 = vadd.f32 %v2674_v11, %v2195_v14  ;;  %v2205_v16 = vadd.f32 %v2201_v13, %v3546_v51 }
0x123b   :  { %v2213_v17 = vsel %vm127_vm0, %v2205_v16, 0.0  ;;  %v2204_v18 = vadd.f32 %v2196_v15, %v3544_v50  ;;  %v2684_v50 = vld [vmem:[%s3741_s10 + $0x38] sm:$0xff] }
0x123c   :  { %2214 = vadd.xlane.f32.xlu1 %v2213_v17  ;;  %2954 = vmatprep.subr.mxu1 %v2684_v50 }
0x123d   :  { %v2210_v47 = vsel %vm127_vm0, %v2204_v18, 0.0  ;;  %2955 = vmatpush3.msra.mxu1 %v2684_v50 }
0x123e   :  { %2211 = vadd.xlane.f32.xlu0 %v2210_v47  ;;  %2956 = vmatprep.subr.mxu1 %v2683_v26 }
0x123f   :  { %2957 = vmatpush3.msra.mxu1 %v2683_v26 }
0x1240   :  { %2958 = vmatprep.subr.mxu1 %v2682_v27 }
0x1241   :  { %2959 = vmatpush3.msra.mxu1 %v2682_v27 }
0x1242   :  { %2960 = vmatprep.subr.mxu1 %v2681_v28 }
0x1243   :  { %2961 = vmatpush3.msra.mxu1 %v2681_v28 }
0x1244   :  { %2984 = vmatprep.subr.mxu1 %v3208_v34 }
0x12c5   :  { %v2215_v19 = vpop.xlane.xlu1 %2214 }
0x12c6   :  { %v2217_v33 = vmul.f32 0.03125, %v2215_v19 }
0x12c7   :  { %v2212_v31 = vpop.xlane.xlu0 %2211 }
0x12c8   :  { %v2216_v20 = vmul.f32 0.03125, %v2212_v31  ;;  %v2219_v21 = vsub.f32 %v2205_v16, %v2217_v33 }
0x12ca   :  { %v2218_v22 = vsub.f32 %v2204_v18, %v2216_v20  ;;  %v2221_v25 = vmul.f32 %v2219_v21, %v2219_v21  ;;  %v2698_v18 = vld [vmem:[%s3744_s13 + $0x1] ss:$0 sm:$0xff] }
0x12cc   :  { %v2220_v23 = vmul.f32 %v2218_v22, %v2218_v22  ;;  %v2225_v51 = vsel %vm127_vm0, %v2221_v25, 0.0 }
0x12ce   :  { %v2222_v24 = vsel %vm127_vm0, %v2220_v23, 0.0 }
0x12cf   :  { %2223 = vadd.xlane.f32.xlu0 %v2222_v24 }
0x12d3   :  { %2226 = vadd.xlane.f32.xlu0 %v2225_v51 }
0x1358   :  { %v2224_v54 = vpop.xlane.xlu0 %2223 }
0x1359   :  { %v2228_v29 = vmul.f32 0.03125, %v2224_v54 }
0x135b   :  { %v2230_v30 = vadd.f32 1e-12, %v2228_v29 }
0x135c   :  { %v2227_v32 = vpop.xlane.xlu0 %2226 }
0x135d   :  { %3059 = vrsqrt.f32 %v2230_v30  ;;  %v2229_v35 = vmul.f32 0.03125, %v2227_v32  ;;  %v2518_v32 = vld [vmem:[#allocation10 + $0x18] sm:$0xff] }
0x135f   :  { %v2231_v36 = vadd.f32 1e-12, %v2229_v35  ;;  %v2517_v35 = vld [vmem:[#allocation10 + $0x10] sm:$0xff] }
0x1361   :  { %3061 = vrsqrt.f32 %v2231_v36  ;;  %v2516_v36 = vld [vmem:[#allocation10 + $0x8] sm:$0xff] }
0x136a   :  { %v3060_v37 = vpop.eup %3059 }
0x136b   :  { %v2234_v40 = vmul.f32 %v3060_v37, %v2218_v22  ;;  %v2515_v37 = vld [vmem:[#allocation10] sm:$0xff] }
0x136d   :  { %v2242_v42 = vmul.f32 %v2679_v38, %v2234_v40 }
0x136e   :  { %v3062_v43 = vpop.eup %3061 }
0x136f   :  { %v2235_v44 = vmul.f32 %v3062_v43, %v2219_v21  ;;  %v3671_v45 = vadd.f32 %v2680_v41, %v2242_v42 }
0x1371   :  { %v2243_v46 = vmul.f32 %v2679_v38, %v2235_v44  ;;  %2962 = vmatprep.mubr.msk.f32.mxu1 %vm127_vm0, %v3671_v45 }
0x1373   :  { %v2251_v48 = vadd.f32 %v2680_v41, %v2243_v46  ;;  %v2703_v46 = vld [vmem:[%s3745_s14 + $0x1] ss:$0 sm:$0xff]  ;;  %s3216_s14 = smov [#allocation11]  }
0x1375   :  { %2963 = vmatmul.mubr.msk.f32.vlgmr.msra.gmra.mxu1 %vm127_vm0, %v2251_v48 }
0x1376   :  { %2992 = vmatprep.mubr.msk.f32.mxu1 %vm3209_vm1, %v3208_v34  ;;  %2985 = vmatpush3.msra.mxu1 %v2518_v32 }
0x1377   :  { %2986 = vmatprep.subr.mxu1 %v3208_v34 }
0x1378   :  { %2987 = vmatpush3.msra.mxu1 %v2517_v35 }
0x1379   :  { %2988 = vmatprep.subr.mxu1 %v3208_v34 }
0x137a   :  { %2989 = vmatpush3.msra.mxu1 %v2516_v36 }
0x137b   :  { %2990 = vmatprep.subr.mxu1 %v3208_v34  ;;  %v2704_v34 = vld [vmem:[%s3746_s15 + $0x1] ss:$0 sm:$0xff]  ;;  %s2608_s15 = sshll.u32 %s3216_s14, 4  ;;  %s2609_s15 = int_to_ptr.vmem [resolvable:$true] %s2608_s15 }
0x137c   :  { %2991 = vmatpush3.msra.mxu1 %v2515_v37  ;;  %s3173_s10 = scalar_lea.vmem %s2609_s15, 32  ;;  %p3178_p12 = scmp.lt.s32.totalorder %s2609_s15, %s2609_s15 }
0x137d   :  { %p3174_p11 = scmp.ne.s32.totalorder %s2609_s15, %s3173_s10  ;;  %p3179_p13 = scmp.lt.s32.totalorder %s3173_s10, %s3173_s10 }
0x137f   :  { %p3180_p0 = por %p3179_p13, %p3178_p12 }
0x1381   :  { %p3181_p1 = pnand %p3180_p0, %p3174_p11 }
0x1435   :  { %v2964_v60 = vpop.f32.mrf.mxu1 }
0x1436   :  { %v2343_v61 = vadd.f32 %v2964_v60, %v2686_v59 }
0x1437   :  { %v2337_v62 = vpop.f32.mrf.mxu1 }
0x1438   :  { %v2349_v63 = vmul.f32 0.044715, %v2343_v61  ;;  %v2338_v0 = vadd.f32 %v2686_v59, %v2337_v62  ;;  %v2347_v15 = vmul.f32 0.5, %v2343_v61  ;;  %v2705_v59 = vld [vmem:[%s3748_s17] ss:$0 sm:$0xff] }
0x143a   :  { %v2351_v1 = vmul.f32 %v2349_v63, %v2343_v61  ;;  %v2348_v2 = vmul.f32 0.044715, %v2338_v0  ;;  %v2346_v13 = vmul.f32 0.5, %v2338_v0 }
0x143c   :  { %v2353_v3 = vmul.f32 %v2351_v1, %v2343_v61  ;;  %v2350_v4 = vmul.f32 %v2348_v2, %v2338_v0 }
0x143e   :  { %v2355_v5 = vadd.f32 %v2353_v3, %v2343_v61  ;;  %v2352_v6 = vmul.f32 %v2350_v4, %v2338_v0 }
0x1440   :  { %v2357_v7 = vmul.f32 0.7978846, %v2355_v5  ;;  %v2354_v8 = vadd.f32 %v2352_v6, %v2338_v0 }
0x1442   :  { %3063 = vtanh.f32 %v2357_v7  ;;  %v2356_v9 = vmul.f32 0.7978846, %v2354_v8 }
0x1444   :  { %3065 = vtanh.f32 %v2356_v9 }
0x144f   :  { %v3064_v10 = vpop.eup %3063 }
0x1450   :  { %v2361_v12 = vadd.f32 1.0, %v3064_v10 }
0x1451   :  { %v3066_v11 = vpop.eup %3065 }
0x1452   :  { %v2360_v14 = vadd.f32 1.0, %v3066_v11  ;;  %v2363_v17 = vmul.f32 %v2361_v12, %v2347_v15 }
0x1454   :  { %v2362_v16 = vmul.f32 %v2360_v14, %v2346_v13 }
0x1456   :  { %2981 = vmatprep.mubr.msk.f32.mxu0 %vm1212_vm4, %v2362_v16 }
0x1457   :  { %2982 = vmatmul.mubr.msk.f32.vlgmr.msra.gmra.mxu0 %vm1212_vm4, %v2363_v17 }
0x1517   :  { %v2983_v47 = vpop.f32.mrf.mxu0 }
0x1518   :  { %v2459_v19 = vadd.f32 %v2983_v47, %v2698_v18 }
0x1519   :  { %v2453_v33 = vpop.f32.mrf.mxu0 }
0x151a   :  { %v2454_v31 = vadd.f32 %v2698_v18, %v2453_v33  ;;  %v2463_v20 = vadd.f32 %v2459_v19, %v2251_v48 }
0x151c   :  { %v2471_v21 = vsel %vm127_vm0, %v2463_v20, 0.0  ;;  %v2462_v22 = vadd.f32 %v2454_v31, %v3671_v45 }
0x151d   :  { %2472 = vadd.xlane.f32.xlu0 %v2471_v21 }
0x151e   :  { %v2468_v23 = vsel %vm127_vm0, %v2462_v22, 0.0 }
0x151f   :  { %2469 = vadd.xlane.f32.xlu1 %v2468_v23 }
0x15a6   :  { %v2473_v24 = vpop.xlane.xlu0 %2472 }
0x15a7   :  { %v2475_v25 = vmul.f32 0.03125, %v2473_v24 }
0x15a8   :  { %v2470_v51 = vpop.xlane.xlu1 %2469 }
0x15a9   :  { %v2477_v50 = vsub.f32 %v2463_v20, %v2475_v25  ;;  %v2474_v26 = vmul.f32 0.03125, %v2470_v51 }
0x15ab   :  { %v2476_v27 = vsub.f32 %v2462_v22, %v2474_v26  ;;  %v2479_v28 = vmul.f32 %v2477_v50, %v2477_v50 }
0x15ad   :  { %v2483_v54 = vsel %vm127_vm0, %v2479_v28, 0.0  ;;  %v2478_v29 = vmul.f32 %v2476_v27, %v2476_v27 }
0x15ae   :  { %2484 = vadd.xlane.f32.xlu0 %v2483_v54 }
0x15af   :  { %v2480_v30 = vsel %vm127_vm0, %v2478_v29, 0.0 }
0x15b0   :  { %2481 = vadd.xlane.f32.xlu1 %v2480_v30 }
0x1637   :  { %v2485_v38 = vpop.xlane.xlu0 %2484 }
0x1638   :  { %v2487_v40 = vmul.f32 0.03125, %v2485_v38 }
0x1639   :  { %v2482_v41 = vpop.xlane.xlu1 %2481 }
0x163a   :  { %v2489_v42 = vadd.f32 1e-12, %v2487_v40  ;;  %v2486_v43 = vmul.f32 0.03125, %v2482_v41 }
0x163c   :  { %3067 = vrsqrt.f32 %v2489_v42  ;;  %v2488_v44 = vadd.f32 1e-12, %v2486_v43 }
0x163e   :  { %3069 = vrsqrt.f32 %v2488_v44 }
0x1649   :  { %v3068_v45 = vpop.eup %3067 }
0x164a   :  { %v2493_v48 = vmul.f32 %v3068_v45, %v2477_v50 }
0x164b   :  { %v3070_v49 = vpop.eup %3069 }
0x164c   :  { %v2492_v39 = vmul.f32 %v3070_v49, %v2476_v27  ;;  %v2501_v52 = vmul.f32 %v2703_v46, %v2493_v48 }
0x164e   :  { %v2500_v53 = vmul.f32 %v2703_v46, %v2492_v39  ;;  %v2509_v55 = vadd.f32 %v2704_v34, %v2501_v52 }
0x1650   :  { %v2508_v56 = vadd.f32 %v2704_v34, %v2500_v53  ;;  %v2511_v57 = vrot.slane %v2509_v55, 7 }
0x1652   :  { %v2514_v58 = vsel %vm2513_vm5, %v2508_v56, %v2511_v57 }
0x1653   :  { %2993 = vmatmul.mubr.msk.f32.vlgmr.msra.gmra.mxu1 %vm127_vm0, %v2514_v58 }
0x1713   :  { %v2595_v60 = vpop.f32.mrf.mxu1 }
0x1714   :  { %v2596_v61 = vadd.f32 %v2705_v59, %v2595_v60 }
0x1715   :  { %v2994_v62 = vpop.f32.mrf.mxu1 }
0x1716   :  { %3071 = vtanh.f32 %v2596_v61 }
0x1723   :  { %v3072_v63 = vpop.eup %3071 }
0x1724   :  { %2601 = vst.msk [vmem:[#allocation11] sm:$0x3] %vm2600_vm6, %v3072_v63 }
0x1725   :  { %3184 = shalt.err (!%p3181_p1)
}
0x1726   :  { %2611 = dma.vmem_to_hbm [thread:$0]  %s2609_s15, 32, %s3749_s18, [#allocation4]  }
0x1727   :  { %3199 = dma.done.wait [#allocation4], 32  }
0x1728   :  { %3200 = vsyncadd [#allocation4], 4294967264 }
0x1729   :  { %2615 = vsyncpa [#allocation3], 1 }
0x172a   :  { %2616 = vsyncpa [#allocation6], 1 }
0x172b   :  { %2617 = vsyncpa [#allocation9], 1 }
0x172c   :  { %2618 = vsyncpa [#allocation4], 1 }

</bundles_post_ra>
